<compile_context>
chip_gen: v7x
topology: tpu7x:2x2x1
jax: 0.10.0
libtpu: 0.0.40
codegen_flags: <defaults>
</compile_context>

<pallas_src>
import jax
import jax.numpy as jnp
from jax.experimental import pallas as pl
from jax.experimental.pallas import tpu as pltpu

ANSWERS = 8             # answers_count
FEATS = 5               # features_extracted_per_branch
BRANCHES = 10           # attr_branches
FB = FEATS * BRANCHES   # 50 fused (feature, branch) columns
IN_FEAT = ANSWERS * FB  # 400 = Linear in-features


def _round_up(x, m):
    return (x + m - 1) // m * m


def _tree_reduce(vals, op):
    """Pairwise reduction (depth 3 for 8 slabs) -> shorter VALU dep chains."""
    vals = list(vals)
    while len(vals) > 1:
        nxt = [op(vals[i], vals[i + 1]) for i in range(0, len(vals) - 1, 2)]
        if len(vals) % 2:
            nxt.append(vals[-1])
        vals = nxt
    return vals[0]


def _sascl_fe_score_kernel(x_ref, w_ref, b_ref, out_ref):
    """x_ref: (A, FB, TB) f32/bf16, w_ref: (A, A, FB) f32, b_ref: (A, 1) f32,
    out_ref: (A, TB) f32 (transposed logits, batch on lanes)."""
    x = x_ref[...].astype(jnp.float32)               # (8, 50, TB)
    w = w_ref[...]                                   # (8, 8, 50)

    # Softmax over the answers axis: leading-dim slabs -> pure VPU max/add,
    # no cross-sublane XLU reduce and no in-kernel reshape/relayout.
    # TODO(synk): `self.softmax` is never defined in the PyTorch source; we
    # assume softmax over the answers dimension (dim=1 of (B, A, F, Br)).
    m = _tree_reduce([x[a] for a in range(ANSWERS)], jnp.maximum)   # (50, TB)
    e = jnp.exp(x - m[None, :, :])                                  # (8, 50, TB)
    s = _tree_reduce([e[a] for a in range(ANSWERS)], jnp.add)       # (50, TB)
    inv_s = pl.reciprocal(s, approx=True)            # EUP slot, ~free

    # Linear(400 -> 8) as 8 small MXU matmuls (one per answer slab), combined
    # with a pairwise add tree:
    #   logits_T[o, b] = sum_a W[o, a*50:(a+1)*50] @ p[a, :, b]
    parts = [
        jnp.dot(w[a], e[a] * inv_s, preferred_element_type=jnp.float32)
        for a in range(ANSWERS)
    ]                                                # each (8, TB)
    acc = _tree_reduce(parts, jnp.add)               # (8, TB)

    out_ref[...] = (acc + b_ref[...]).astype(out_ref.dtype)   # (8,TB)+(8,1)


def natural_to_slab(rules_preds):
    """(B, 400) torch-natural layout -> (A, FB, B) slab layout.

    Costs one extra HBM round trip of the activations; prefer having the
    producer (the frozen rules_classifier glue) emit the slab layout directly.
    """
    B = rules_preds.shape[0]
    return rules_preds.reshape(B, ANSWERS, FB).transpose(1, 2, 0)


def _activation_block_spec(tb_eff, num_tiles):
    idx = lambda i: (0, 0, i)
    if num_tiles >= 3:
        try:
            # Third buffer hides DMA jitter and the first-tile bubble.
            return pl.BlockSpec((ANSWERS, FB, tb_eff), idx,
                                pipeline_mode=pl.Buffered(3))
        except (TypeError, AttributeError):
            pass  # older JAX without pipeline_mode: plain double buffering
    return pl.BlockSpec((ANSWERS, FB, tb_eff), idx)


def sascl_fe_score(rules_preds_slab, weight, bias, *, tb=2048,
                   transposed_out=False):
    """Forward of SASCL_FeatureExtractor_Score after the frozen classifier.

    rules_preds_slab: (8, 50, B) f32/bf16 -- classifier output in slab layout
                      (answers, feature*branch, batch); batch on lanes.
                      Use natural_to_slab() if you only have (B, 400).
    weight:           (8, 400) f32 -- torch nn.Linear weight (out, in).
    bias:             (8,)     f32 -- torch nn.Linear bias.
    Returns (B, 8) f32 logits, or (8, B) if transposed_out=True.
    """
    A, fb, B = rules_preds_slab.shape
    assert A == ANSWERS and fb == FB, "expected (8, 50, B) slab layout"

    # --- batch tile selection ------------------------------------------------
    if B <= 256:
        tb_eff = B                                    # one full-dim block
    else:
        # Keep >= 2 grid steps so "parallel" can shard over v7x's two TCs,
        # and keep the tile a lane-dense multiple of 128.
        cap = _round_up(pl.cdiv(B, 2), 128)
        tb_eff = min(max(_round_up(min(tb, B), 128), 128), cap)
    num_tiles = pl.cdiv(B, tb_eff)
    # No explicit padding: the last block may overrun B.  Garbage batch lanes
    # stay confined to their lanes (elementwise ops + K-contraction are
    # lane-local) and the partial output block write-back masks them off.

    # Weight regrouped per answer slab: w3[a, o, k] = weight[o, a*50 + k].
    w3 = weight.astype(jnp.float32).reshape(ANSWERS, ANSWERS, FB).transpose(1, 0, 2)
    b2 = bias.astype(jnp.float32).reshape(ANSWERS, 1)

    # VMEM budget: up to 3 buffers of the input block + ~2 blocks of in-kernel
    # temporaries (exp slab, probabilities) + resident weights + output.
    itemsize = jnp.dtype(rules_preds_slab.dtype).itemsize
    in_block_bytes = ANSWERS * _round_up(FB, 8) * tb_eff * itemsize
    vmem_limit = int(min(64 * 2**20,
                         max(32 * 2**20, 6 * in_block_bytes + 4 * 2**20)))

    logits_t = pl.pallas_call(
        _sascl_fe_score_kernel,
        out_shape=jax.ShapeDtypeStruct((ANSWERS, B), jnp.float32),
        grid=(num_tiles,),
        in_specs=[
            _activation_block_spec(tb_eff, num_tiles),
            # Constant block index -> weight/bias stay resident, no re-DMA.
            pl.BlockSpec((ANSWERS, ANSWERS, FB), lambda i: (0, 0, 0)),
            pl.BlockSpec((ANSWERS, 1), lambda i: (0, 0)),
        ],
        out_specs=pl.BlockSpec((ANSWERS, tb_eff), lambda i: (0, i)),
        compiler_params=pltpu.CompilerParams(
            # Independent batch tiles -> shard grid across v7x's two TCs.
            dimension_semantics=("parallel",),
            vmem_limit_bytes=vmem_limit,
        ),
    )(rules_preds_slab, w3, b2)

    if transposed_out:
        return logits_t                   # (8, B): lets the consumer fuse the T
    return logits_t.T                     # (B, 8), matching the torch module


if __name__ == "__main__":
    key = jax.random.PRNGKey(0)
    k_s1, k_s2, k_s3, k_rcw, k_rcb, k_w, k_b = jax.random.split(key, 7)

    SET_DIM = 32   # synthetic per-set feature size fed to the stub classifier

    # TODO(synk): the real `rules_classifier` is an external frozen module
    # (with its attr-branch to_logit heads replaced by Identity); stubbed here
    # as a deterministic frozen linear.  Per the perf review, the stub emits
    # the (A, FB, B) slab layout directly (leading-dim reshape, no transpose).
    rc_w = jax.random.normal(k_rcw, (SET_DIM, IN_FEAT), dtype=jnp.float32) * 0.1
    rc_b = jax.random.normal(k_rcb, (IN_FEAT,), dtype=jnp.float32) * 0.1

    # Deterministic init of self.to_logit = nn.Linear(400, 8) (torch layout).
    w = jax.random.normal(k_w, (ANSWERS, IN_FEAT), dtype=jnp.float32) / jnp.sqrt(
        jnp.float32(IN_FEAT))                             # (out, in)
    b = jax.random.normal(k_b, (ANSWERS,), dtype=jnp.float32) * 0.01

    def frozen_classifier_slab(sets):
        # (400, B) -> (8, 50, B): a free leading-dim split, no transpose copy.
        return (rc_w.T @ sets.T + rc_b[:, None]).reshape(ANSWERS, FB, -1)

    def reference_from_slab(x_slab):
        # Exactly the torch module math on the same activation values.
        rules_preds = x_slab.reshape(IN_FEAT, -1).T       # (B, 400)
        x4 = rules_preds.reshape(-1, ANSWERS, FEATS, BRANCHES)
        p = jax.nn.softmax(x4, axis=1)
        feats = p.reshape(-1, IN_FEAT)
        return feats @ w.T + b

    # Three small cases covering: single full-dim tile, 2-tile partial last
    # block (no padding), and a >=3-step grid (triple-buffered activation DMA).
    cases = [
        (200, k_s1, {}),                  # B <= 256 -> single block of 200
        (300, k_s2, {}),                  # tb_eff=256, grid=2, last block 44 valid
        (900, k_s3, {"tb": 256}),         # small tb only for test coverage
    ]

    for B, k_sets, kwargs in cases:
        sets = jax.random.normal(k_sets, (B, SET_DIM), dtype=jnp.float32)
        x_slab = frozen_classifier_slab(sets)             # (8, 50, B) -- glue
        logits = sascl_fe_score(x_slab, w, b, **kwargs)
        jax.block_until_ready(logits)

        logits_ref = reference_from_slab(x_slab)
        assert logits.shape == (B, ANSWERS)
        # Tolerance relaxed vs exact f32 because the softmax denominator uses
        # the EUP approximate reciprocal (pl.reciprocal(approx=True)).
        assert jnp.allclose(logits, logits_ref, atol=5e-3, rtol=5e-3), (
            f"mismatch at B={B}")

    print("KERNEL_OK")
</pallas_src>

<mosaic_0001>
module attributes {stable_mosaic.version = 11 : i64} {
  func.func @_sascl_fe_score_kernel(%arg0: i32, %arg1: memref<8x50x200xf32, #tpu.memory_space<vmem>>, %arg2: memref<8x8x50xf32, #tpu.memory_space<vmem>>, %arg3: memref<8x1xf32, #tpu.memory_space<vmem>>, %arg4: memref<8x200xf32, #tpu.memory_space<vmem>>) attributes {dimension_semantics = [#tpu.dimension_semantics<parallel>], iteration_bounds = array<i64: 1>, scalar_prefetch = 0 : i64, scratch_operands = 0 : i64, tpu.core_type = #tpu.core_type<tc>, window_params = [{transform_indices = @transform_0, window_bounds = array<i64: 8, 50, 200>}, {pipeline_mode = #tpu.pipeline_mode<synchronous>, transform_indices = @transform_1, window_bounds = array<i64: 8, 8, 50>}, {pipeline_mode = #tpu.pipeline_mode<synchronous>, transform_indices = @transform_2, window_bounds = array<i64: 8, 1>}, {transform_indices = @transform_3, window_bounds = array<i64: 8, 200>}]} {
    %c0 = arith.constant 0 : index
    %c0_0 = arith.constant 0 : index
    %c0_1 = arith.constant 0 : index
    %0 = vector.load %arg1[%c0, %c0_0, %c0_1] : memref<8x50x200xf32, #tpu.memory_space<vmem>>, vector<8x50x200xf32>
    %c0_2 = arith.constant 0 : index
    %c0_3 = arith.constant 0 : index
    %c0_4 = arith.constant 0 : index
    %1 = vector.load %arg2[%c0_2, %c0_3, %c0_4] : memref<8x8x50xf32, #tpu.memory_space<vmem>>, vector<8x8x50xf32>
    %2 = vector.extract_strided_slice %0 {offsets = [0, 0, 0], sizes = [1, 50, 200], strides = [1, 1, 1]} : vector<8x50x200xf32> to vector<1x50x200xf32>
    %3 = vector.shape_cast %2 : vector<1x50x200xf32> to vector<50x200xf32>
    %4 = vector.extract_strided_slice %0 {offsets = [1, 0, 0], sizes = [1, 50, 200], strides = [1, 1, 1]} : vector<8x50x200xf32> to vector<1x50x200xf32>
    %5 = vector.shape_cast %4 : vector<1x50x200xf32> to vector<50x200xf32>
    %6 = vector.extract_strided_slice %0 {offsets = [2, 0, 0], sizes = [1, 50, 200], strides = [1, 1, 1]} : vector<8x50x200xf32> to vector<1x50x200xf32>
    %7 = vector.shape_cast %6 : vector<1x50x200xf32> to vector<50x200xf32>
    %8 = vector.extract_strided_slice %0 {offsets = [3, 0, 0], sizes = [1, 50, 200], strides = [1, 1, 1]} : vector<8x50x200xf32> to vector<1x50x200xf32>
    %9 = vector.shape_cast %8 : vector<1x50x200xf32> to vector<50x200xf32>
    %10 = vector.extract_strided_slice %0 {offsets = [4, 0, 0], sizes = [1, 50, 200], strides = [1, 1, 1]} : vector<8x50x200xf32> to vector<1x50x200xf32>
    %11 = vector.shape_cast %10 : vector<1x50x200xf32> to vector<50x200xf32>
    %12 = vector.extract_strided_slice %0 {offsets = [5, 0, 0], sizes = [1, 50, 200], strides = [1, 1, 1]} : vector<8x50x200xf32> to vector<1x50x200xf32>
    %13 = vector.shape_cast %12 : vector<1x50x200xf32> to vector<50x200xf32>
    %14 = vector.extract_strided_slice %0 {offsets = [6, 0, 0], sizes = [1, 50, 200], strides = [1, 1, 1]} : vector<8x50x200xf32> to vector<1x50x200xf32>
    %15 = vector.shape_cast %14 : vector<1x50x200xf32> to vector<50x200xf32>
    %16 = vector.extract_strided_slice %0 {offsets = [7, 0, 0], sizes = [1, 50, 200], strides = [1, 1, 1]} : vector<8x50x200xf32> to vector<1x50x200xf32>
    %17 = vector.shape_cast %16 : vector<1x50x200xf32> to vector<50x200xf32>
    %18 = arith.maximumf %3, %5 : vector<50x200xf32>
    %19 = arith.maximumf %7, %9 : vector<50x200xf32>
    %20 = arith.maximumf %11, %13 : vector<50x200xf32>
    %21 = arith.maximumf %15, %17 : vector<50x200xf32>
    %22 = arith.maximumf %18, %19 : vector<50x200xf32>
    %23 = arith.maximumf %20, %21 : vector<50x200xf32>
    %24 = arith.maximumf %22, %23 : vector<50x200xf32>
    %25 = vector.shape_cast %24 : vector<50x200xf32> to vector<1x50x200xf32>
    %26 = vector.broadcast %25 : vector<1x50x200xf32> to vector<8x50x200xf32>
    %27 = arith.subf %0, %26 : vector<8x50x200xf32>
    %28 = math.exp %27 : vector<8x50x200xf32>
    %29 = vector.extract_strided_slice %28 {offsets = [0, 0, 0], sizes = [1, 50, 200], strides = [1, 1, 1]} : vector<8x50x200xf32> to vector<1x50x200xf32>
    %30 = vector.shape_cast %29 : vector<1x50x200xf32> to vector<50x200xf32>
    %31 = vector.extract_strided_slice %28 {offsets = [1, 0, 0], sizes = [1, 50, 200], strides = [1, 1, 1]} : vector<8x50x200xf32> to vector<1x50x200xf32>
    %32 = vector.shape_cast %31 : vector<1x50x200xf32> to vector<50x200xf32>
    %33 = vector.extract_strided_slice %28 {offsets = [2, 0, 0], sizes = [1, 50, 200], strides = [1, 1, 1]} : vector<8x50x200xf32> to vector<1x50x200xf32>
    %34 = vector.shape_cast %33 : vector<1x50x200xf32> to vector<50x200xf32>
    %35 = vector.extract_strided_slice %28 {offsets = [3, 0, 0], sizes = [1, 50, 200], strides = [1, 1, 1]} : vector<8x50x200xf32> to vector<1x50x200xf32>
    %36 = vector.shape_cast %35 : vector<1x50x200xf32> to vector<50x200xf32>
    %37 = vector.extract_strided_slice %28 {offsets = [4, 0, 0], sizes = [1, 50, 200], strides = [1, 1, 1]} : vector<8x50x200xf32> to vector<1x50x200xf32>
    %38 = vector.shape_cast %37 : vector<1x50x200xf32> to vector<50x200xf32>
    %39 = vector.extract_strided_slice %28 {offsets = [5, 0, 0], sizes = [1, 50, 200], strides = [1, 1, 1]} : vector<8x50x200xf32> to vector<1x50x200xf32>
    %40 = vector.shape_cast %39 : vector<1x50x200xf32> to vector<50x200xf32>
    %41 = vector.extract_strided_slice %28 {offsets = [6, 0, 0], sizes = [1, 50, 200], strides = [1, 1, 1]} : vector<8x50x200xf32> to vector<1x50x200xf32>
    %42 = vector.shape_cast %41 : vector<1x50x200xf32> to vector<50x200xf32>
    %43 = vector.extract_strided_slice %28 {offsets = [7, 0, 0], sizes = [1, 50, 200], strides = [1, 1, 1]} : vector<8x50x200xf32> to vector<1x50x200xf32>
    %44 = vector.shape_cast %43 : vector<1x50x200xf32> to vector<50x200xf32>
    %45 = arith.addf %30, %32 : vector<50x200xf32>
    %46 = arith.addf %34, %36 : vector<50x200xf32>
    %47 = arith.addf %38, %40 : vector<50x200xf32>
    %48 = arith.addf %42, %44 : vector<50x200xf32>
    %49 = arith.addf %45, %46 : vector<50x200xf32>
    %50 = arith.addf %47, %48 : vector<50x200xf32>
    %51 = arith.addf %49, %50 : vector<50x200xf32>
    %52 = tpu.reciprocal %51 {approx = true} : vector<50x200xf32> -> vector<50x200xf32>
    %53 = vector.extract_strided_slice %1 {offsets = [0, 0, 0], sizes = [1, 8, 50], strides = [1, 1, 1]} : vector<8x8x50xf32> to vector<1x8x50xf32>
    %54 = vector.shape_cast %53 : vector<1x8x50xf32> to vector<8x50xf32>
    %55 = vector.extract_strided_slice %28 {offsets = [0, 0, 0], sizes = [1, 50, 200], strides = [1, 1, 1]} : vector<8x50x200xf32> to vector<1x50x200xf32>
    %56 = vector.shape_cast %55 : vector<1x50x200xf32> to vector<50x200xf32>
    %57 = arith.mulf %56, %52 : vector<50x200xf32>
    %cst = arith.constant dense<0.000000e+00> : vector<8x200xf32>
    %58 = tpu.matmul %54, %57, %cst {dimension_numbers = #tpu.dot_dimension_numbers<[1], [0], [0], [1], [0, 0, 1, 1], [], []>} : vector<8x50xf32>, vector<50x200xf32>, vector<8x200xf32> -> vector<8x200xf32>
    %59 = vector.extract_strided_slice %1 {offsets = [1, 0, 0], sizes = [1, 8, 50], strides = [1, 1, 1]} : vector<8x8x50xf32> to vector<1x8x50xf32>
    %60 = vector.shape_cast %59 : vector<1x8x50xf32> to vector<8x50xf32>
    %61 = vector.extract_strided_slice %28 {offsets = [1, 0, 0], sizes = [1, 50, 200], strides = [1, 1, 1]} : vector<8x50x200xf32> to vector<1x50x200xf32>
    %62 = vector.shape_cast %61 : vector<1x50x200xf32> to vector<50x200xf32>
    %63 = arith.mulf %62, %52 : vector<50x200xf32>
    %cst_5 = arith.constant dense<0.000000e+00> : vector<8x200xf32>
    %64 = tpu.matmul %60, %63, %cst_5 {dimension_numbers = #tpu.dot_dimension_numbers<[1], [0], [0], [1], [0, 0, 1, 1], [], []>} : vector<8x50xf32>, vector<50x200xf32>, vector<8x200xf32> -> vector<8x200xf32>
    %65 = vector.extract_strided_slice %1 {offsets = [2, 0, 0], sizes = [1, 8, 50], strides = [1, 1, 1]} : vector<8x8x50xf32> to vector<1x8x50xf32>
    %66 = vector.shape_cast %65 : vector<1x8x50xf32> to vector<8x50xf32>
    %67 = vector.extract_strided_slice %28 {offsets = [2, 0, 0], sizes = [1, 50, 200], strides = [1, 1, 1]} : vector<8x50x200xf32> to vector<1x50x200xf32>
    %68 = vector.shape_cast %67 : vector<1x50x200xf32> to vector<50x200xf32>
    %69 = arith.mulf %68, %52 : vector<50x200xf32>
    %cst_6 = arith.constant dense<0.000000e+00> : vector<8x200xf32>
    %70 = tpu.matmul %66, %69, %cst_6 {dimension_numbers = #tpu.dot_dimension_numbers<[1], [0], [0], [1], [0, 0, 1, 1], [], []>} : vector<8x50xf32>, vector<50x200xf32>, vector<8x200xf32> -> vector<8x200xf32>
    %71 = vector.extract_strided_slice %1 {offsets = [3, 0, 0], sizes = [1, 8, 50], strides = [1, 1, 1]} : vector<8x8x50xf32> to vector<1x8x50xf32>
    %72 = vector.shape_cast %71 : vector<1x8x50xf32> to vector<8x50xf32>
    %73 = vector.extract_strided_slice %28 {offsets = [3, 0, 0], sizes = [1, 50, 200], strides = [1, 1, 1]} : vector<8x50x200xf32> to vector<1x50x200xf32>
    %74 = vector.shape_cast %73 : vector<1x50x200xf32> to vector<50x200xf32>
    %75 = arith.mulf %74, %52 : vector<50x200xf32>
    %cst_7 = arith.constant dense<0.000000e+00> : vector<8x200xf32>
    %76 = tpu.matmul %72, %75, %cst_7 {dimension_numbers = #tpu.dot_dimension_numbers<[1], [0], [0], [1], [0, 0, 1, 1], [], []>} : vector<8x50xf32>, vector<50x200xf32>, vector<8x200xf32> -> vector<8x200xf32>
    %77 = vector.extract_strided_slice %1 {offsets = [4, 0, 0], sizes = [1, 8, 50], strides = [1, 1, 1]} : vector<8x8x50xf32> to vector<1x8x50xf32>
    %78 = vector.shape_cast %77 : vector<1x8x50xf32> to vector<8x50xf32>
    %79 = vector.extract_strided_slice %28 {offsets = [4, 0, 0], sizes = [1, 50, 200], strides = [1, 1, 1]} : vector<8x50x200xf32> to vector<1x50x200xf32>
    %80 = vector.shape_cast %79 : vector<1x50x200xf32> to vector<50x200xf32>
    %81 = arith.mulf %80, %52 : vector<50x200xf32>
    %cst_8 = arith.constant dense<0.000000e+00> : vector<8x200xf32>
    %82 = tpu.matmul %78, %81, %cst_8 {dimension_numbers = #tpu.dot_dimension_numbers<[1], [0], [0], [1], [0, 0, 1, 1], [], []>} : vector<8x50xf32>, vector<50x200xf32>, vector<8x200xf32> -> vector<8x200xf32>
    %83 = vector.extract_strided_slice %1 {offsets = [5, 0, 0], sizes = [1, 8, 50], strides = [1, 1, 1]} : vector<8x8x50xf32> to vector<1x8x50xf32>
    %84 = vector.shape_cast %83 : vector<1x8x50xf32> to vector<8x50xf32>
    %85 = vector.extract_strided_slice %28 {offsets = [5, 0, 0], sizes = [1, 50, 200], strides = [1, 1, 1]} : vector<8x50x200xf32> to vector<1x50x200xf32>
    %86 = vector.shape_cast %85 : vector<1x50x200xf32> to vector<50x200xf32>
    %87 = arith.mulf %86, %52 : vector<50x200xf32>
    %cst_9 = arith.constant dense<0.000000e+00> : vector<8x200xf32>
    %88 = tpu.matmul %84, %87, %cst_9 {dimension_numbers = #tpu.dot_dimension_numbers<[1], [0], [0], [1], [0, 0, 1, 1], [], []>} : vector<8x50xf32>, vector<50x200xf32>, vector<8x200xf32> -> vector<8x200xf32>
    %89 = vector.extract_strided_slice %1 {offsets = [6, 0, 0], sizes = [1, 8, 50], strides = [1, 1, 1]} : vector<8x8x50xf32> to vector<1x8x50xf32>
    %90 = vector.shape_cast %89 : vector<1x8x50xf32> to vector<8x50xf32>
    %91 = vector.extract_strided_slice %28 {offsets = [6, 0, 0], sizes = [1, 50, 200], strides = [1, 1, 1]} : vector<8x50x200xf32> to vector<1x50x200xf32>
    %92 = vector.shape_cast %91 : vector<1x50x200xf32> to vector<50x200xf32>
    %93 = arith.mulf %92, %52 : vector<50x200xf32>
    %cst_10 = arith.constant dense<0.000000e+00> : vector<8x200xf32>
    %94 = tpu.matmul %90, %93, %cst_10 {dimension_numbers = #tpu.dot_dimension_numbers<[1], [0], [0], [1], [0, 0, 1, 1], [], []>} : vector<8x50xf32>, vector<50x200xf32>, vector<8x200xf32> -> vector<8x200xf32>
    %95 = vector.extract_strided_slice %1 {offsets = [7, 0, 0], sizes = [1, 8, 50], strides = [1, 1, 1]} : vector<8x8x50xf32> to vector<1x8x50xf32>
    %96 = vector.shape_cast %95 : vector<1x8x50xf32> to vector<8x50xf32>
    %97 = vector.extract_strided_slice %28 {offsets = [7, 0, 0], sizes = [1, 50, 200], strides = [1, 1, 1]} : vector<8x50x200xf32> to vector<1x50x200xf32>
    %98 = vector.shape_cast %97 : vector<1x50x200xf32> to vector<50x200xf32>
    %99 = arith.mulf %98, %52 : vector<50x200xf32>
    %cst_11 = arith.constant dense<0.000000e+00> : vector<8x200xf32>
    %100 = tpu.matmul %96, %99, %cst_11 {dimension_numbers = #tpu.dot_dimension_numbers<[1], [0], [0], [1], [0, 0, 1, 1], [], []>} : vector<8x50xf32>, vector<50x200xf32>, vector<8x200xf32> -> vector<8x200xf32>
    %101 = arith.addf %58, %64 : vector<8x200xf32>
    %102 = arith.addf %70, %76 : vector<8x200xf32>
    %103 = arith.addf %82, %88 : vector<8x200xf32>
    %104 = arith.addf %94, %100 : vector<8x200xf32>
    %105 = arith.addf %101, %102 : vector<8x200xf32>
    %106 = arith.addf %103, %104 : vector<8x200xf32>
    %107 = arith.addf %105, %106 : vector<8x200xf32>
    %c0_12 = arith.constant 0 : index
    %c0_13 = arith.constant 0 : index
    %108 = vector.load %arg3[%c0_12, %c0_13] : memref<8x1xf32, #tpu.memory_space<vmem>>, vector<8x1xf32>
    %109 = vector.broadcast %108 : vector<8x1xf32> to vector<8x200xf32>
    %110 = arith.addf %107, %109 : vector<8x200xf32>
    %c0_14 = arith.constant 0 : index
    %c0_15 = arith.constant 0 : index
    %111 = vector.load %arg4[%c0_14, %c0_15] : memref<8x200xf32, #tpu.memory_space<vmem>>, vector<8x200xf32>
    tpu.vector_store %arg4[%c0_14, %c0_15], %110 {strides = array<i32>} : memref<8x200xf32, #tpu.memory_space<vmem>>, vector<8x200xf32>,
    return
  }
  func.func @transform_0(%arg0: i32) -> (i32, i32, i32) {
    %c0_i32 = arith.constant 0 : i32
    %c0_i32_0 = arith.constant 0 : i32
    %c0_i32_1 = arith.constant 0 : i32
    return %c0_i32, %c0_i32_0, %arg0 : i32, i32, i32
  }
  func.func @transform_1(%arg0: i32) -> (i32, i32, i32) {
    %c0_i32 = arith.constant 0 : i32
    %c0_i32_0 = arith.constant 0 : i32
    %c0_i32_1 = arith.constant 0 : i32
    %c0_i32_2 = arith.constant 0 : i32
    return %c0_i32, %c0_i32_0, %c0_i32_1 : i32, i32, i32
  }
  func.func @transform_2(%arg0: i32) -> (i32, i32) {
    %c0_i32 = arith.constant 0 : i32
    %c0_i32_0 = arith.constant 0 : i32
    %c0_i32_1 = arith.constant 0 : i32
    return %c0_i32, %c0_i32_0 : i32, i32
  }
  func.func @transform_3(%arg0: i32) -> (i32, i32) {
    %c0_i32 = arith.constant 0 : i32
    %c0_i32_0 = arith.constant 0 : i32
    return %c0_i32, %arg0 : i32, i32
  }
}

</mosaic_0001>

<bundles_post_ra>
// kernel: tpu_custom_call.1
= control target key start
LH: loop header
LB: loop body
LE: loop exit
PB: predicated region body
PF: predicated region fallthrough
CT: control target
= control target key end

     0   :  { %s3692_s0 = inlined_call_operand.vmem [shape: f32[8,50,200], index: 0, kind: input, shape index: {}]   ;;  %s3693_s1 = inlined_call_operand.vmem [shape: f32[8,8,50], index: 1, kind: input, shape index: {}]   ;;  %s3694_s2 = inlined_call_operand.vmem [shape: f32[8,1], index: 2, kind: input, shape index: {}]   ;;  %s3695_s3 = inlined_call_operand.hbm [shape: f32[8,200], index: 3, kind: output, shape index: {}]  }
   0x1   :  { %v1906_v0 = vld [vmem:[%s3692_s0 + $0x8] sm:$0xff]  ;;  %v1911_v1 = vld [vmem:[%s3692_s0 + $0x18] sm:$0xff]  ;;  %v2000_v24 = vld [vmem:[%s3692_s0] sm:$0xff] }
   0x2   :  { %v1916_v2 = vld [vmem:[%s3692_s0 + $0x78] sm:$0xff]  ;;  %v1921_v3 = vld [vmem:[%s3692_s0 + $0x88] sm:$0xff]  ;;  %v2005_v25 = vld [vmem:[%s3692_s0 + $0x10] sm:$0xff] }
   0x3   :  { %v1926_v4 = vld [vmem:[%s3692_s0 + $0xe8] sm:$0xff]  ;;  %v1931_v5 = vld [vmem:[%s3692_s0 + $0xf8] sm:$0xff]  ;;  %v136_v6 = vmax.f32 %v1906_v0, %v1916_v2  ;;  %v138_v10 = vmax.f32 %v1911_v1, %v1921_v3  ;;  %v2012_v28 = vld [vmem:[%s3692_s0 + $0x70] sm:$0xff] }
   0x4   :  { %v1938_v7 = vld [vmem:[%s3692_s0 + $0x158] sm:$0xff]  ;;  %v1943_v8 = vld [vmem:[%s3692_s0 + $0x168] sm:$0xff]  ;;  %v2017_v29 = vld [vmem:[%s3692_s0 + $0x80] sm:$0xff]  ;;  %v135_v35 = vmax.f32 %v2000_v24, %v2012_v28 }
   0x5   :  { %v1948_v9 = vld [vmem:[%s3692_s0 + $0x1c8] sm:$0xff]  ;;  %v1955_v11 = vld [vmem:[%s3692_s0 + $0x1d8] sm:$0xff]  ;;  %v150_v14 = vmax.f32 %v1926_v4, %v1938_v7  ;;  %v152_v15 = vmax.f32 %v1931_v5, %v1943_v8  ;;  %v2022_v30 = vld [vmem:[%s3692_s0 + $0xe0] sm:$0xff]  ;;  %v137_v36 = vmax.f32 %v2005_v25, %v2017_v29 }
   0x6   :  { %v1960_v12 = vld [vmem:[%s3692_s0 + $0x238] sm:$0xff]  ;;  %v1965_v13 = vld [vmem:[%s3692_s0 + $0x248] sm:$0xff]  ;;  %v2027_v32 = vld [vmem:[%s3692_s0 + $0xf0] sm:$0xff] }
   0x7   :  { %v1974_v16 = vld [vmem:[%s3692_s0 + $0x2a8] sm:$0xff]  ;;  %v1979_v17 = vld [vmem:[%s3692_s0 + $0x2b8] sm:$0xff]  ;;  %v164_v19 = vmax.f32 %v1948_v9, %v1960_v12  ;;  %v166_v20 = vmax.f32 %v1955_v11, %v1965_v13  ;;  %v192_v23 = vmax.f32 %v136_v6, %v150_v14  ;;  %v194_v27 = vmax.f32 %v138_v10, %v152_v15  ;;  %v2032_v33 = vld [vmem:[%s3692_s0 + $0x150] sm:$0xff] }
   0x8   :  { %v1984_v18 = vld [vmem:[%s3692_s0 + $0x318] sm:$0xff]  ;;  %v1993_v21 = vld [vmem:[%s3692_s0 + $0x328] sm:$0xff]  ;;  %v2037_v34 = vld [vmem:[%s3692_s0 + $0x160] sm:$0xff]  ;;  %v149_v41 = vmax.f32 %v2022_v30, %v2032_v33 }
   0x9   :  { %v178_v22 = vmax.f32 %v1974_v16, %v1984_v18  ;;  %v180_v26 = vmax.f32 %v1979_v17, %v1993_v21  ;;  %v2046_v38 = vld [vmem:[%s3692_s0 + $0x1c0] sm:$0xff]  ;;  %v2051_v39 = vld [vmem:[%s3692_s0 + $0x1d0] sm:$0xff]  ;;  %v151_v42 = vmax.f32 %v2027_v32, %v2037_v34 }
   0xa   :  { %v2056_v40 = vld [vmem:[%s3692_s0 + $0x230] sm:$0xff]  ;;  %v2065_v44 = vld [vmem:[%s3692_s0 + $0x240] sm:$0xff]  ;;  %v191_v50 = vmax.f32 %v135_v35, %v149_v41 }
   0xb   :  { %v206_v31 = vmax.f32 %v164_v19, %v178_v22  ;;  %v208_v37 = vmax.f32 %v166_v20, %v180_v26  ;;  %v163_v46 = vmax.f32 %v2046_v38, %v2056_v40  ;;  %v165_v47 = vmax.f32 %v2051_v39, %v2065_v44  ;;  %v2080_v56 = vld [vmem:[%s3692_s0 + $0x2a0] sm:$0xff]  ;;  %v2089_v61 = vld [vmem:[%s3692_s0 + $0x2b0] sm:$0xff]  ;;  %v2134_v22 = vld [vmem:[%s3692_s0 + $0x108] sm:$0xff] }
   0xc   :  { %v193_v51 = vmax.f32 %v137_v36, %v151_v42  ;;  %v2094_v62 = vld [vmem:[%s3692_s0 + $0x310] sm:$0xff]  ;;  %v2099_v63 = vld [vmem:[%s3692_s0 + $0x320] sm:$0xff]  ;;  %v2144_v26 = vld [vmem:[%s3692_s0 + $0x178] sm:$0xff] }
   0xd   :  { %v220_v43 = vmax.f32 %v192_v23, %v206_v31  ;;  %v222_v45 = vmax.f32 %v194_v27, %v208_v37  ;;  %v177_v10 = vmax.f32 %v2080_v56, %v2094_v62  ;;  %v2139_v23 = vld [vmem:[%s3692_s0 + $0x118] sm:$0xff]  ;;  %v2149_v27 = vld [vmem:[%s3692_s0 + $0x188] sm:$0xff] }
   0xe   :  { %v2154_v31 = vld [vmem:[%s3692_s0 + $0x1e8] sm:$0xff] }
   0xf   :  { %v234_v48 = vsub.f32 %v1906_v0, %v220_v43  ;;  %v248_v49 = vsub.f32 %v1916_v2, %v220_v43  ;;  %v236_v52 = vsub.f32 %v1911_v1, %v222_v45  ;;  %v250_v53 = vsub.f32 %v1921_v3, %v222_v45 }
  0x10   :  { %v262_v54 = vsub.f32 %v1926_v4, %v220_v43  ;;  %v276_v55 = vsub.f32 %v1938_v7, %v220_v43  ;;  %v264_v57 = vsub.f32 %v1931_v5, %v222_v45  ;;  %v278_v58 = vsub.f32 %v1943_v8, %v222_v45 }
  0x11   :  { %v290_v59 = vsub.f32 %v1948_v9, %v220_v43  ;;  %v292_v60 = vsub.f32 %v1955_v11, %v222_v45  ;;  %v304_v0 = vsub.f32 %v1960_v12, %v220_v43  ;;  %v306_v1 = vsub.f32 %v1965_v13, %v222_v45  ;;  %v2114_v12 = vld [vmem:[%s3692_s0 + $0x28] sm:$0xff]  ;;  %v2119_v13 = vld [vmem:[%s3692_s0 + $0x98] sm:$0xff] }
  0x12   :  { %v318_v2 = vsub.f32 %v1974_v16, %v220_v43  ;;  %v320_v3 = vsub.f32 %v1979_v17, %v222_v45  ;;  %v332_v4 = vsub.f32 %v1984_v18, %v220_v43  ;;  %v347_v5 = vmul.f32 1.442695, %v234_v48  ;;  %v2124_v17 = vld [vmem:[%s3692_s0 + $0x38] sm:$0xff]  ;;  %v2129_v18 = vld [vmem:[%s3692_s0 + $0xa8] sm:$0xff] }
  0x13   :  { %v351_v6 = vmul.f32 1.442695, %v236_v52  ;;  %v375_v7 = vmul.f32 1.442695, %v248_v49  ;;  %v334_v8 = vsub.f32 %v1993_v21, %v222_v45  ;;  %v379_v9 = vmul.f32 1.442695, %v250_v53 }
  0x14   :  { %v179_v11 = vmax.f32 %v2089_v61, %v2099_v63  ;;  %1604 = vpow2.f32 %v347_v5  ;;  %v403_v14 = vmul.f32 1.442695, %v262_v54  ;;  %v407_v15 = vmul.f32 1.442695, %v264_v57  ;;  %v2159_v45 = vld [vmem:[%s3692_s0 + $0x1f8] sm:$0xff]  ;;  %v2169_v49 = vld [vmem:[%s3692_s0 + $0x268] sm:$0xff] }
  0x15   :  { %v431_v16 = vmul.f32 1.442695, %v276_v55  ;;  %1606 = vpow2.f32 %v351_v6  ;;  %v435_v19 = vmul.f32 1.442695, %v278_v58  ;;  %v459_v20 = vmul.f32 1.442695, %v290_v59 }
  0x16   :  { %v463_v21 = vmul.f32 1.442695, %v292_v60  ;;  %1608 = vpow2.f32 %v375_v7  ;;  %v487_v35 = vmul.f32 1.442695, %v304_v0  ;;  %v491_v36 = vmul.f32 1.442695, %v306_v1 }
  0x17   :  { %v515_v37 = vmul.f32 1.442695, %v318_v2  ;;  %1610 = vpow2.f32 %v379_v9  ;;  %v519_v41 = vmul.f32 1.442695, %v320_v3  ;;  %v205_v42 = vmax.f32 %v163_v46, %v177_v10  ;;  %v2164_v48 = vld [vmem:[%s3692_s0 + $0x258] sm:$0xff]  ;;  %v2174_v46 = vld [vmem:[%s3692_s0 + $0x2c8] sm:$0xff] }
  0x18   :  { %v207_v43 = vmax.f32 %v165_v47, %v179_v11  ;;  %1612 = vpow2.f32 %v403_v14  ;;  %v543_v52 = vmul.f32 1.442695, %v332_v4  ;;  %v547_v53 = vmul.f32 1.442695, %v334_v8  ;;  %v2179_v47 = vld [vmem:[%s3692_s0 + $0x338] sm:$0xff] }
  0x19   :  { %v140_v54 = vmax.f32 %v2114_v12, %v2119_v13  ;;  %1614 = vpow2.f32 %v407_v15  ;;  %v2183_v55 = vmax.f32 %v191_v50, %v205_v42  ;;  %v142_v58 = vmax.f32 %v2124_v17, %v2129_v18 }
  0x1a   :  { %v2185_v57 = vmax.f32 %v193_v51, %v207_v43  ;;  %1616 = vpow2.f32 %v431_v16  ;;  %v154_v59 = vmax.f32 %v2134_v22, %v2144_v26  ;;  %v156_v60 = vmax.f32 %v2139_v23, %v2149_v27  ;;  %v2253_v16 = vld [vmem:[%s3692_s0 + $0x348] sm:$0xff] }
  0x1b   :  { %v168_v0 = vmax.f32 %v2154_v31, %v2164_v48  ;;  %1618 = vpow2.f32 %v435_v19  ;;  %v233_v50 = vsub.f32 %v2000_v24, %v2183_v55  ;;  %v170_v51 = vmax.f32 %v2159_v45, %v2169_v49 }
  0x1c   :  { %v182_v1 = vmax.f32 %v2174_v46, %v2179_v47  ;;  %1620 = vpow2.f32 %v459_v20  ;;  %v235_v2 = vsub.f32 %v2005_v25, %v2185_v57  ;;  %v247_v3 = vsub.f32 %v2012_v28, %v2183_v55 }
  0x1d   :  { %v249_v4 = vsub.f32 %v2017_v29, %v2185_v57  ;;  %1622 = vpow2.f32 %v463_v21  ;;  %v261_v24 = vsub.f32 %v2022_v30, %v2183_v55  ;;  %v263_v5 = vsub.f32 %v2027_v32, %v2185_v57 }
  0x1e   :  { %v275_v6 = vsub.f32 %v2032_v33, %v2183_v55  ;;  %v2213_v7 = vpop.eup %1604  ;;  %1624 = vpow2.f32 %v487_v35  ;;  %v277_v25 = vsub.f32 %v2037_v34, %v2185_v57  ;;  %v289_v28 = vsub.f32 %v2046_v38, %v2183_v55 }
  0x1f   :  { %v291_v29 = vsub.f32 %v2051_v39, %v2185_v57  ;;  %v2221_v8 = vpop.eup %1606  ;;  %1626 = vpow2.f32 %v491_v36  ;;  %v303_v30 = vsub.f32 %v2056_v40, %v2183_v55  ;;  %v305_v32 = vsub.f32 %v2065_v44, %v2185_v57 }
  0x20   :  { %v317_v33 = vsub.f32 %v2080_v56, %v2183_v55  ;;  %v2229_v9 = vpop.eup %1608  ;;  %1628 = vpow2.f32 %v515_v37  ;;  %v319_v34 = vsub.f32 %v2089_v61, %v2185_v57  ;;  %v331_v38 = vsub.f32 %v2094_v62, %v2183_v55  ;;  %v2248_v62 = vld [vmem:[%s3692_s0 + $0x2d8] sm:$0xff] }
  0x21   :  { %v345_v39 = vmul.f32 1.442695, %v233_v50  ;;  %v2235_v10 = vpop.eup %1610  ;;  %1630 = vpow2.f32 %v519_v41  ;;  %v570_v40 = vadd.f32 %v2229_v9, %v2213_v7  ;;  %v333_v44 = vsub.f32 %v2099_v63, %v2185_v57 }
  0x22   :  { %v349_v56 = vmul.f32 1.442695, %v235_v2  ;;  %v2241_v11 = vpop.eup %1612  ;;  %1632 = vpow2.f32 %v543_v52  ;;  %v572_v61 = vadd.f32 %v2235_v10, %v2221_v8  ;;  %v373_v14 = vmul.f32 1.442695, %v247_v3 }
  0x23   :  { %3766 = vst [vmem:[#allocation5_spill] sm:$0xff] %v2241_v11  ;;  %v377_v15 = vmul.f32 1.442695, %v249_v4  ;;  %v2255_v63 = vpop.eup %1614  ;;  %1634 = vpow2.f32 %v547_v53  ;;  %v401_v19 = vmul.f32 1.442695, %v261_v24  ;;  %v184_v24 = vmax.f32 %v2248_v62, %v2253_v16 }
  0x24   :  { %3767 = vst [vmem:[#allocation6_spill] sm:$0xff] %v2255_v63  ;;  %v405_v20 = vmul.f32 1.442695, %v263_v5  ;;  %v429_v21 = vmul.f32 1.442695, %v275_v6  ;;  %v2257_v35 = vpop.eup %1616  ;;  %1636 = vpow2.f32 %v345_v39  ;;  %v196_v5 = vmax.f32 %v140_v54, %v154_v59  ;;  %v2282_v6 = vld [vmem:[%s3692_s0 + $0x20] sm:$0xff] }
  0x25   :  { %v433_v36 = vmul.f32 1.442695, %v277_v25  ;;  %v457_v37 = vmul.f32 1.442695, %v289_v28  ;;  %v461_v41 = vmul.f32 1.442695, %v291_v29  ;;  %v2259_v42 = vpop.eup %1618  ;;  %v584_v43 = vadd.f32 %v2257_v35, %v2241_v11 }
  0x26   :  { %3768 = vst [vmem:[#allocation7_spill] sm:$0xff] %v2259_v42  ;;  %1638 = vpow2.f32 %v349_v56  ;;  %v485_v52 = vmul.f32 1.442695, %v303_v30  ;;  %v489_v55 = vmul.f32 1.442695, %v305_v32  ;;  %v2263_v57 = vpop.eup %1620  ;;  %v586_v53 = vadd.f32 %v2259_v42, %v2255_v63  ;;  %v2287_v25 = vld [vmem:[%s3692_s0 + $0x90] sm:$0xff] }
  0x27   :  { %3769 = vst [vmem:[#allocation8_spill] sm:$0xff] %v2263_v57  ;;  %1640 = vpow2.f32 %v373_v14  ;;  %v513_v50 = vmul.f32 1.442695, %v317_v33  ;;  %v517_v2 = vmul.f32 1.442695, %v319_v34  ;;  %v2267_v3 = vpop.eup %1622  ;;  %v198_v54 = vmax.f32 %v142_v58, %v156_v60  ;;  %v2308_v30 = vld [vmem:[%s3692_s0 + $0x30] sm:$0xff] }
  0x28   :  { %3770 = vst [vmem:[#allocation9_spill] sm:$0xff] %v2267_v3  ;;  %1642 = vpow2.f32 %v377_v15  ;;  %v2269_v4 = vmul.f32 1.442695, %v331_v38  ;;  %v2289_v28 = vpop.eup %1624  ;;  %v2291_v29 = vmul.f32 1.442695, %v333_v44  ;;  %v210_v59 = vmax.f32 %v168_v0, %v182_v1  ;;  %v2313_v32 = vld [vmem:[%s3692_s0 + $0xa0] sm:$0xff] }
  0x29   :  { %3771 = vst [vmem:[#allocation10_spill] sm:$0xff] %v2289_v28  ;;  %1644 = vpow2.f32 %v401_v19  ;;  %v2318_v58 = vld [vmem:[%s3692_s0 + $0x100] sm:$0xff]  ;;  %v2320_v60 = vpop.eup %1626  ;;  %v626_v33 = vadd.f32 %v584_v43, %v570_v40  ;;  %v628_v34 = vadd.f32 %v586_v53, %v572_v61  ;;  %v212_v0 = vmax.f32 %v170_v51, %v184_v24  ;;  %v2328_v1 = vld [vmem:[%s3692_s0 + $0x110] sm:$0xff] }
  0x2a   :  { %3772 = vst [vmem:[#allocation11_spill] sm:$0xff] %v2320_v60  ;;  %1646 = vpow2.f32 %v405_v20  ;;  %v2333_v38 = vld [vmem:[%s3692_s0 + $0x170] sm:$0xff]  ;;  %v2338_v39 = vld [vmem:[%s3692_s0 + $0x180] sm:$0xff]  ;;  %v2340_v40 = vpop.eup %1628  ;;  %v598_v51 = vadd.f32 %v2289_v28, %v2263_v57  ;;  %v2344_v44 = vmax.f32 %v196_v5, %v210_v59  ;;  %v600_v14 = vadd.f32 %v2320_v60, %v2267_v3 }
  0x2b   :  { %3773 = vst [vmem:[#allocation12_spill] sm:$0xff] %v2340_v40  ;;  %1648 = vpow2.f32 %v429_v21  ;;  %v2348_v61 = vpop.eup %1630  ;;  %v2352_v15 = vmax.f32 %v198_v54, %v212_v0 }
  0x2c   :  { %3774 = vst [vmem:[#allocation13_spill] sm:$0xff] %v2348_v61  ;;  %1650 = vpow2.f32 %v433_v36  ;;  %v2356_v20 = vpop.eup %1632  ;;  %v238_v21 = vsub.f32 %v2114_v12, %v2344_v44  ;;  %v252_v5 = vsub.f32 %v2119_v13, %v2344_v44 }
  0x2d   :  { %3775 = vst [vmem:[#allocation14_spill] sm:$0xff] %v2356_v20  ;;  %1652 = vpow2.f32 %v457_v37  ;;  %v2364_v24 = vpop.eup %1634  ;;  %v612_v36 = vadd.f32 %v2356_v20, %v2340_v40  ;;  %v266_v37 = vsub.f32 %v2134_v22, %v2344_v44  ;;  %v240_v59 = vsub.f32 %v2124_v17, %v2352_v15 }
  0x2e   :  { %3776 = vst [vmem:[#allocation15_spill] sm:$0xff] %v2364_v24  ;;  %1654 = vpow2.f32 %v461_v41  ;;  %v2372_v54 = vpop.eup %1636  ;;  %v614_v12 = vadd.f32 %v2364_v24, %v2348_v61  ;;  %v254_v0 = vsub.f32 %v2129_v18, %v2352_v15  ;;  %v268_v13 = vsub.f32 %v2139_v23, %v2352_v15 }
  0x2f   :  { %1656 = vpow2.f32 %v485_v52  ;;  %v640_v41 = vadd.f32 %v612_v36, %v598_v51  ;;  %v280_v22 = vsub.f32 %v2144_v26, %v2344_v44  ;;  %v282_v17 = vsub.f32 %v2149_v27, %v2352_v15 }
  0x30   :  { %v2380_v19 = vpop.eup %1638  ;;  %1658 = vpow2.f32 %v489_v55  ;;  %v642_v56 = vadd.f32 %v614_v12, %v600_v14  ;;  %v294_v18 = vsub.f32 %v2154_v31, %v2344_v44  ;;  %v296_v23 = vsub.f32 %v2159_v45, %v2352_v15 }
  0x31   :  { %v2386_v53 = vpop.eup %1640  ;;  %1660 = vpow2.f32 %v513_v50  ;;  %v654_v51 = vadd.f32 %v640_v41, %v626_v33  ;;  %v308_v26 = vsub.f32 %v2164_v48, %v2344_v44 }
  0x32   :  { %v2392_v52 = vpop.eup %1642  ;;  %1662 = vpow2.f32 %v517_v2 }
  0x33   :  { %8 = vsyncpa [#allocation3], 0  ;;  %v2398_v55 = vpop.eup %1644  ;;  %v656_v50 = vadd.f32 %v642_v56, %v628_v34  ;;  %1664 = vpow2.f32 %v2269_v4  ;;  %v569_v27 = vadd.f32 %v2386_v53, %v2372_v54  ;;  %v310_v31 = vsub.f32 %v2169_v49, %v2352_v15  ;;  %s1882_s9 = smov [#allocation2]  }
  0x34   :  { %3777 = vst [vmem:[#allocation16_spill] sm:$0xff] %v2398_v55  ;;  %v2405_v33 = vpop.eup %1646  ;;  %1666 = vrcp.f32 %v654_v51  ;;  %v571_v45 = vadd.f32 %v2392_v52, %v2380_v19  ;;  %v322_v48 = vsub.f32 %v2174_v46, %v2344_v44  ;;  %v324_v2 = vsub.f32 %v2248_v62, %v2352_v15  ;;  %s1458_s10 = sshll.u32 %s1882_s9, 4  ;;  %s1459_s10 = int_to_ptr.vmem [resolvable:$true] %s1458_s10 }
  0x35   :  { %3778 = vst [vmem:[#allocation17_spill] sm:$0xff] %v2405_v33  ;;  %v2413_v34 = vpop.eup %1648  ;;  %1668 = vrcp.f32 %v656_v50  ;;  %v355_v4 = vmul.f32 1.442695, %v238_v21  ;;  %v359_v56 = vmul.f32 1.442695, %v240_v59  ;;  %v336_v12 = vsub.f32 %v2179_v47, %v2344_v44  ;;  %v2436_v47 = vld [vmem:[%s3692_s0 + $0x1f0] sm:$0xff]  ;;  %p1861_p1 = scmp.lt.s32.totalorder %s1459_s10, %s1459_s10 }
  0x36   :  { %3779 = vst [vmem:[#allocation18_spill] sm:$0xff] %v2413_v34  ;;  %v383_v14 = vmul.f32 1.442695, %v252_v5  ;;  %v2415_v36 = vpop.eup %1650  ;;  %1670 = vpow2.f32 %v2291_v29  ;;  %v583_v49 = vadd.f32 %v2413_v34, %v2398_v55  ;;  %v387_v46 = vmul.f32 1.442695, %v254_v0  ;;  %v2431_v29 = vld [vmem:[%s3692_s0 + $0x1e0] sm:$0xff] }
  0x37   :  { %3780 = vst [vmem:[#allocation19_spill] sm:$0xff] %v2415_v36  ;;  %v2422_v41 = vpop.eup %1652  ;;  %v585_v62 = vadd.f32 %v2415_v36, %v2405_v33  ;;  %1672 = vpow2.f32 %v355_v4  ;;  %v411_v5 = vmul.f32 1.442695, %v266_v37  ;;  %v415_v0 = vmul.f32 1.442695, %v268_v13  ;;  %v2443_v37 = vld [vmem:[%s3692_s0 + $0x250] sm:$0xff] }
  0x38   :  { %3781 = vst [vmem:[#allocation20_spill] sm:$0xff] %v2422_v41  ;;  %v2438_v44 = vpop.eup %1654  ;;  %v625_v59 = vadd.f32 %v583_v49, %v569_v27  ;;  %1674 = vpow2.f32 %v359_v56  ;;  %v439_v51 = vmul.f32 1.442695, %v280_v22  ;;  %v2448_v50 = vld [vmem:[%s3692_s0 + $0x260] sm:$0xff]  ;;  %v443_v43 = vmul.f32 1.442695, %v282_v17 }
  0x39   :  { %3782 = vst [vmem:[#allocation21_spill] sm:$0xff] %v2438_v44  ;;  %v2450_v4 = vpop.eup %1656  ;;  %v2452_v21 = vadd.f32 %v585_v62, %v571_v45  ;;  %1676 = vpow2.f32 %v383_v14  ;;  %v467_v27 = vmul.f32 1.442695, %v294_v18  ;;  %v2457_v13 = vld [vmem:[%s3692_s0 + $0x2c0] sm:$0xff]  ;;  %v2462_v22 = vld [vmem:[%s3692_s0 + $0x2d0] sm:$0xff]  ;;  %v167_v24 = vmax.f32 %v2431_v29, %v2443_v37 }
  0x3a   :  { %3783 = vst [vmem:[#allocation22_spill] sm:$0xff] %v2450_v4  ;;  %v2464_v56 = vpop.eup %1658  ;;  %v597_v49 = vadd.f32 %v2450_v4, %v2422_v41  ;;  %1678 = vpow2.f32 %v387_v46  ;;  %v471_v45 = vmul.f32 1.442695, %v296_v23  ;;  %v495_v14 = vmul.f32 1.442695, %v308_v26  ;;  %v2471_v17 = vld [vmem:[%s3692_s0 + $0x330] sm:$0xff] }
  0x3b   :  { %3784 = vst [vmem:[#allocation23_spill] sm:$0xff] %v2464_v56  ;;  %v2476_v18 = vld [vmem:[%s3692_s0 + $0x340] sm:$0xff]  ;;  %v2478_v62 = vpop.eup %1660  ;;  %v599_v61 = vadd.f32 %v2464_v56, %v2438_v44  ;;  %1680 = vpow2.f32 %v411_v5  ;;  %v499_v40 = vmul.f32 1.442695, %v310_v31  ;;  %v523_v46 = vmul.f32 1.442695, %v322_v48 }
  0x3c   :  { %3785 = vst [vmem:[#allocation24_spill] sm:$0xff] %v2478_v62  ;;  %v2482_v23 = vpop.eup %1662  ;;  %1682 = vpow2.f32 %v415_v0  ;;  %v527_v26 = vmul.f32 1.442695, %v324_v2  ;;  %v169_v20 = vmax.f32 %v2436_v47, %v2448_v50  ;;  %v181_v4 = vmax.f32 %v2457_v13, %v2471_v17 }
  0x3d   :  { %3786 = vst [vmem:[#allocation25_spill] sm:$0xff] %v2482_v23  ;;  %v2488_v41 = vpop.eup %1664  ;;  %1684 = vpow2.f32 %v439_v51  ;;  %v183_v31 = vmax.f32 %v2462_v22, %v2476_v18  ;;  %v3788_v48 = vmax.f32 %v2318_v58, %v2333_v38  ;;  %v3789_v2 = vmax.f32 %v2282_v6, %v2287_v25 }
  0x3e   :  { %3787 = vst [vmem:[#allocation26_spill] sm:$0xff] %v2488_v41  ;;  %v2500_v0 = vpop.eup %1666  ;;  %v611_v44 = vadd.f32 %v2488_v41, %v2478_v62  ;;  %1686 = vpow2.f32 %v443_v43  ;;  %v551_v51 = vmul.f32 1.442695, %v336_v12  ;;  %v3790_v56 = vmax.f32 %v2328_v1, %v2338_v39 }
  0x3f   :  { %v195_v5 = vmax.f32 %v3789_v2, %v3788_v48  ;;  %v3791_v3 = vmax.f32 %v2308_v30, %v2313_v32  ;;  %v2510_v60 = vpop.eup %1668  ;;  %v696_v28 = vmul.f32 %v2500_v0, %v2229_v9  ;;  %v682_v48 = vmul.f32 %v2500_v0, %v2213_v7 }
  0x40   :  { %3792 = vst [vmem:[#allocation27_spill] sm:$0xff] %v2510_v60  ;;  %1688 = vpow2.f32 %v467_v27  ;;  %v209_v2 = vmax.f32 %v167_v24, %v181_v4  ;;  %v2516_v62 = vpop.eup %1670  ;;  %v698_v43 = vmul.f32 %v2510_v60, %v2235_v10  ;;  %v684_v12 = vmul.f32 %v2510_v60, %v2221_v8  ;;  %v2531_v24 = vld [vmem:[%s3692_s0 + $0x48] sm:$0xff]  ;;  %v2536_v8 = vld [vmem:[%s3692_s0 + $0xb8] sm:$0xff] }
  0x41   :  { %v197_v57 = vmax.f32 %v3791_v3, %v3790_v56  ;;  %3793 = vst [vmem:[#allocation28_spill] sm:$0xff] %v2516_v62  ;;  %v639_v41 = vadd.f32 %v611_v44, %v597_v49  ;;  %1690 = vpow2.f32 %v471_v45  ;;  %v2522_v3 = vpop.eup %1672  ;;  %v613_v9 = vadd.f32 %v2516_v62, %v2482_v23  ;;  %v2659_v62 = vld [vmem:[%s3692_s0 + $0x208] sm:$0xff] }
  0x42   :  { %1692 = vpow2.f32 %v495_v14  ;;  %v211_v56 = vmax.f32 %v169_v20, %v183_v31  ;;  %v2526_v7 = vmax.f32 %v195_v5, %v209_v2  ;;  %v2538_v10 = vpop.eup %1674  ;;  %v1490_v44 = vpack.c.bf16 %v698_v43, %v696_v28 }
  0x43   :  { %v1538_v4 = vpack.c.bf16 %v684_v12, %v682_v48  ;;  %v653_v27 = vadd.f32 %v639_v41, %v625_v59  ;;  %1694 = vpow2.f32 %v499_v40  ;;  %v2540_v49 = vpop.eup %1676  ;;  %v641_v20 = vadd.f32 %v613_v9, %v599_v61 }
  0x44   :  { %1696 = vpow2.f32 %v523_v46  ;;  %v2542_v45 = vmax.f32 %v197_v57, %v211_v56  ;;  %v2544_v14 = vpop.eup %1678  ;;  %1491 = vmatprep.subr.bf16.mxu1 %v1490_v44  ;;  %v3794_v31 = vsub.f32 %v2253_v16, %v2352_v15  ;;  %v237_v28 = vsub.f32 %v2282_v6, %v2526_v7 }
  0x45   :  { %1539 = vmatprep.subr.bf16.mxu0 %v1538_v4  ;;  %1698 = vrcp.f32 %v653_v27  ;;  %v2553_v41 = vpop.eup %1680  ;;  %v655_v57 = vadd.f32 %v641_v20, %v2452_v21  ;;  %v574_v61 = vadd.f32 %v2540_v49, %v2522_v3  ;;  %v251_v59 = vsub.f32 %v2287_v25, %v2526_v7 }
  0x46   :  { %v555_v5 = vmul.f32 1.442695, %v3794_v31  ;;  %3795 = vst [vmem:[#allocation29_spill] sm:$0xff] %v2553_v41  ;;  %1700 = vpow2.f32 %v527_v26  ;;  %v2560_v46 = vpop.eup %1682  ;;  %v576_v16 = vadd.f32 %v2544_v14, %v2538_v10  ;;  %v239_v6 = vsub.f32 %v2308_v30, %v2542_v45 }
  0x47   :  { %3796 = vst [vmem:[#allocation30_spill] sm:$0xff] %v2560_v46  ;;  %1702 = vpow2.f32 %v551_v51  ;;  %v265_v15 = vsub.f32 %v2318_v58, %v2526_v7  ;;  %v2568_v21 = vpop.eup %1684  ;;  %v253_v26 = vsub.f32 %v2313_v32, %v2542_v45  ;;  %v267_v25 = vsub.f32 %v2328_v1, %v2542_v45 }
  0x48   :  { %3797 = vst [vmem:[#allocation31_spill] sm:$0xff] %v2568_v21  ;;  %1704 = vrcp.f32 %v655_v57  ;;  %v279_v51 = vsub.f32 %v2333_v38, %v2526_v7  ;;  %v2576_v48 = vpop.eup %1686  ;;  %v588_v30 = vadd.f32 %v2568_v21, %v2553_v41  ;;  %v281_v58 = vsub.f32 %v2338_v39, %v2542_v45  ;;  %v2618_v57 = vld [vmem:[%s3692_s0 + $0xc8] sm:$0xff] }
  0x49   :  { %3798 = vst [vmem:[#allocation32_spill] sm:$0xff] %v2576_v48  ;;  %1706 = vpow2.f32 %v555_v5  ;;  %v293_v2 = vsub.f32 %v2431_v29, %v2526_v7  ;;  %v590_v32 = vadd.f32 %v2576_v48, %v2560_v46  ;;  %v295_v1 = vsub.f32 %v2436_v47, %v2542_v45 }
  0x4a   :  { %v2584_v43 = vpop.eup %1688  ;;  %v307_v38 = vsub.f32 %v2443_v37, %v2526_v7  ;;  %v309_v12 = vsub.f32 %v2448_v50, %v2542_v45  ;;  %v321_v39 = vsub.f32 %v2457_v13, %v2526_v7  ;;  %v353_v56 = vmul.f32 1.442695, %v237_v28  ;;  %v2613_v28 = vld [vmem:[%s3692_s0 + $0x58] sm:$0xff] }
  0x4b   :  { %3799 = vst [vmem:[#allocation33_spill] sm:$0xff] %v2584_v43  ;;  %v2594_v9 = vpop.eup %1690  ;;  %v357_v44 = vmul.f32 1.442695, %v239_v6  ;;  %v630_v27 = vadd.f32 %v588_v30, %v574_v61  ;;  %v381_v37 = vmul.f32 1.442695, %v251_v59  ;;  %v2606_v50 = vadd.f32 %v590_v32, %v576_v16 }
  0x4c   :  { %3800 = vst [vmem:[#allocation34_spill] sm:$0xff] %v2594_v9  ;;  %v2600_v4 = vpop.eup %1692  ;;  %v385_v20 = vmul.f32 1.442695, %v253_v26  ;;  %1708 = vpow2.f32 %v353_v56  ;;  %v409_v5 = vmul.f32 1.442695, %v265_v15  ;;  %v2627_v15 = vld [vmem:[%s3692_s0 + $0x128] sm:$0xff] }
  0x4d   :  { %3801 = vst [vmem:[#allocation35_spill] sm:$0xff] %v2600_v4  ;;  %v2604_v31 = vpop.eup %1694  ;;  %v602_v59 = vadd.f32 %v2600_v4, %v2584_v43  ;;  %1710 = vpow2.f32 %v357_v44  ;;  %v413_v16 = vmul.f32 1.442695, %v267_v25  ;;  %v437_v6 = vmul.f32 1.442695, %v279_v51  ;;  %v2632_v26 = vld [vmem:[%s3692_s0 + $0x138] sm:$0xff] }
  0x4e   :  { %3802 = vst [vmem:[#allocation36_spill] sm:$0xff] %v2604_v31  ;;  %v2620_v61 = vpop.eup %1696  ;;  %v604_v32 = vadd.f32 %v2604_v31, %v2594_v9  ;;  %1712 = vpow2.f32 %v381_v37  ;;  %v441_v56 = vmul.f32 1.442695, %v281_v58  ;;  %v465_v44 = vmul.f32 1.442695, %v293_v2  ;;  %v2641_v25 = vld [vmem:[%s3692_s0 + $0x198] sm:$0xff] }
  0x4f   :  { %3803 = vst [vmem:[#allocation37_spill] sm:$0xff] %v2620_v61  ;;  %v2634_v30 = vpop.eup %1698  ;;  %v2646_v51 = vld [vmem:[%s3692_s0 + $0x1a8] sm:$0xff]  ;;  %1714 = vpow2.f32 %v385_v20  ;;  %v469_v47 = vmul.f32 1.442695, %v295_v1  ;;  %v493_v29 = vmul.f32 1.442695, %v307_v38  ;;  %v158_v20 = vmax.f32 %v2627_v15, %v2641_v25 }
  0x50   :  { %3804 = vst [vmem:[#allocation38_spill] sm:$0xff] %v2634_v30  ;;  %v2648_v13 = vpop.eup %1700  ;;  %v497_v40 = vmul.f32 1.442695, %v309_v12  ;;  %v695_v58 = vmul.f32 %v2634_v30, %v2386_v53  ;;  %v681_v2 = vmul.f32 %v2634_v30, %v2372_v54  ;;  %1716 = vpow2.f32 %v409_v5  ;;  %v2664_v1 = vld [vmem:[%s3692_s0 + $0x278] sm:$0xff]  ;;  %v2678_v12 = vld [vmem:[%s3692_s0 + $0x288] sm:$0xff] }
  0x51   :  { %3805 = vst [vmem:[#allocation39_spill] sm:$0xff] %v2648_v13  ;;  %v2650_v23 = vpop.eup %1702  ;;  %v521_v37 = vmul.f32 1.442695, %v321_v39  ;;  %1718 = vpow2.f32 %v413_v16  ;;  %v2673_v54 = vld [vmem:[%s3692_s0 + $0x218] sm:$0xff]  ;;  %v146_v39 = vmax.f32 %v2613_v28, %v2618_v57  ;;  %v160_v43 = vmax.f32 %v2632_v26, %v2646_v51 }
  0x52   :  { %3806 = vst [vmem:[#allocation40_spill] sm:$0xff] %v2650_v23  ;;  %v2666_v38 = vpop.eup %1704  ;;  %v616_v53 = vadd.f32 %v2650_v23, %v2620_v61  ;;  %1720 = vpow2.f32 %v437_v6  ;;  %v2693_v23 = vld [vmem:[%s3692_s0 + $0x2e8] sm:$0xff]  ;;  %v2698_v9 = vld [vmem:[%s3692_s0 + $0x358] sm:$0xff]  ;;  %v172_v4 = vmax.f32 %v2659_v62, %v2664_v1  ;;  %vm713_vm0 = vcmask 1041408  }
  0x53   :  { %3807 = vst [vmem:[#allocation41_spill] sm:$0xff] %v2666_v38  ;;  %v2684_v5 = vpop.eup %1706  ;;  %v697_v16 = vmul.f32 %v2666_v38, %v2392_v52  ;;  %v683_v61 = vmul.f32 %v2666_v38, %v2380_v19  ;;  %1722 = vpow2.f32 %v441_v56  ;;  %v2707_v19 = vld [vmem:[%s3692_s0 + $0x2f8] sm:$0xff]  ;;  %v2712_v6 = vld [vmem:[%s3692_s0 + $0x368] sm:$0xff]  ;;  %vm709_vm1 = vcmask 408576  }
  0x54   :  { %3808 = vst [vmem:[#allocation42_spill] sm:$0xff] %v2684_v5  ;;  %v618_v52 = vadd.f32 %v2684_v5, %v2648_v13  ;;  %v644_v31 = vadd.f32 %v616_v53, %v602_v59  ;;  %1724 = vpow2.f32 %v465_v44  ;;  %v174_v59 = vmax.f32 %v2673_v54, %v2678_v12 }
  0x55   :  { %v1492_v46 = vpack.c.bf16 %v697_v16, %v695_v58  ;;  %v1540_v41 = vpack.c.bf16 %v683_v61, %v681_v2  ;;  %1726 = vpow2.f32 %v469_v47  ;;  %v186_v13 = vmax.f32 %v2693_v23, %v2698_v9  ;;  %v2735_v47 = vld [vmem:[%s3692_s0 + $0x50] sm:$0xff]  ;;  %v2751_v2 = vld [vmem:[%s3692_s0 + $0xc0] sm:$0xff] }
  0x56   :  { %v646_v56 = vadd.f32 %v618_v52, %v604_v32  ;;  %v658_v53 = vadd.f32 %v644_v31, %v630_v27  ;;  %v2720_v5 = vpop.eup %1708  ;;  %1728 = vpow2.f32 %v493_v29  ;;  %v188_v48 = vmax.f32 %v2707_v19, %v2712_v6  ;;  %v2730_v27 = vld [vmem:[%s3692_s0 + $0x40] sm:$0xff]  ;;  %v2771_v16 = vld [vmem:[%s3692_s0 + $0x130] sm:$0xff] }
  0x57   :  { %1493 = vmatpush1.bf16.msra.mxu1 %v1492_v46  ;;  %1541 = vmatpush1.bf16.msra.mxu0 %v1540_v41  ;;  %v3809_v61 = vmax.f32 %v2531_v24, %v2536_v8  ;;  %v202_v58 = vmax.f32 %v146_v39, %v160_v43  ;;  %v2740_v41 = vld [vmem:[%s3692_s0 + $0xb0] sm:$0xff]  ;;  %v2742_v46 = vpop.eup %1710  ;;  %v3810_v43 = vsub.f32 %v2462_v22, %v2542_v45  ;;  %v2756_v39 = vld [vmem:[%s3692_s0 + $0x120] sm:$0xff]  ;;  %vm1450_vm2 = vcmask 588800  }
  0x58   :  { %v660_v29 = vadd.f32 %v646_v56, %v2606_v50  ;;  %1730 = vrcp.f32 %v658_v53  ;;  %v214_v32 = vmax.f32 %v172_v4, %v186_v13  ;;  %v2761_v50 = vld [vmem:[%s3692_s0 + $0x190] sm:$0xff]  ;;  %v3811_v22 = vsub.f32 %v2471_v17, %v2526_v7  ;;  %v2776_v52 = vld [vmem:[%s3692_s0 + $0x1a0] sm:$0xff] }
  0x59   :  { %v200_v44 = vmax.f32 %v3809_v61, %v158_v20  ;;  %v525_v31 = vmul.f32 1.442695, %v3810_v43  ;;  %v2763_v20 = vpop.eup %1712  ;;  %1732 = vpow2.f32 %v497_v40  ;;  %v216_v13 = vmax.f32 %v174_v59, %v188_v48  ;;  %v2788_v7 = vld [vmem:[%s3692_s0 + $0x200] sm:$0xff]  ;;  %v2793_v48 = vld [vmem:[%s3692_s0 + $0x270] sm:$0xff] }
  0x5a   :  { %v549_v4 = vmul.f32 1.442695, %v3811_v22  ;;  %v2778_v56 = vpop.eup %1714  ;;  %1734 = vrcp.f32 %v660_v29  ;;  %v3812_v40 = vsub.f32 %v2476_v18, %v2542_v45  ;;  %v573_v43 = vadd.f32 %v2763_v20, %v2720_v5 }
  0x5b   :  { %v2783_v17 = vmax.f32 %v200_v44, %v214_v32  ;;  %v2797_v61 = vpop.eup %1716  ;;  %1736 = vpow2.f32 %v521_v37  ;;  %v2799_v18 = vmax.f32 %v202_v58, %v216_v13  ;;  %v575_v32 = vadd.f32 %v2778_v56, %v2742_v46 }
  0x5c   :  { %v553_v53 = vmul.f32 1.442695, %v3812_v40  ;;  %v2805_v29 = vpop.eup %1718  ;;  %1738 = vpow2.f32 %v525_v31 }
  0x5d   :  { %v2813_v58 = vpop.eup %1720  ;;  %1740 = vpow2.f32 %v549_v4  ;;  %v242_v22 = vsub.f32 %v2531_v24, %v2783_v17  ;;  %v256_v13 = vsub.f32 %v2536_v8, %v2783_v17  ;;  %v244_v37 = vsub.f32 %v2613_v28, %v2799_v18 }
  0x5e   :  { %v2821_v40 = vpop.eup %1722  ;;  %1742 = vpow2.f32 %v553_v53  ;;  %v587_v45 = vadd.f32 %v2813_v58, %v2797_v61  ;;  %v258_v4 = vsub.f32 %v2618_v57, %v2799_v18  ;;  %v270_v24 = vsub.f32 %v2627_v15, %v2783_v17 }
  0x5f   :  { %v2829_v59 = vpop.eup %1724  ;;  %v272_v8 = vsub.f32 %v2632_v26, %v2799_v18  ;;  %v284_v53 = vsub.f32 %v2641_v25, %v2783_v17  ;;  %v286_v31 = vsub.f32 %v2646_v51, %v2799_v18  ;;  %v589_v28 = vadd.f32 %v2821_v40, %v2805_v29 }
  0x60   :  { %3813 = vst [vmem:[#allocation43_spill] sm:$0xff] %v2829_v59  ;;  %v2839_v44 = vpop.eup %1726  ;;  %v298_v57 = vsub.f32 %v2659_v62, %v2783_v17  ;;  %v300_v15 = vsub.f32 %v2673_v54, %v2799_v18  ;;  %v312_v26 = vsub.f32 %v2664_v1, %v2783_v17  ;;  %v629_v25 = vadd.f32 %v587_v45, %v573_v43 }
  0x61   :  { %3814 = vst [vmem:[#allocation44_spill] sm:$0xff] %v2839_v44  ;;  %v2849_v21 = vpop.eup %1728  ;;  %v314_v51 = vsub.f32 %v2678_v12, %v2799_v18  ;;  %v363_v55 = vmul.f32 1.442695, %v242_v22  ;;  %v367_v36 = vmul.f32 1.442695, %v244_v37  ;;  %v631_v22 = vadd.f32 %v589_v28, %v575_v32 }
  0x62   :  { %v2855_v38 = vpop.eup %1730  ;;  %v391_v54 = vmul.f32 1.442695, %v256_v13  ;;  %v395_v30 = vmul.f32 1.442695, %v258_v4  ;;  %v419_v45 = vmul.f32 1.442695, %v270_v24  ;;  %v601_v32 = vadd.f32 %v2849_v21, %v2829_v59 }
  0x63   :  { %3815 = vst [vmem:[#allocation45_spill] sm:$0xff] %v2855_v38  ;;  %v2859_v34 = vpop.eup %1732  ;;  %v700_v1 = vmul.f32 %v2855_v38, %v2540_v49  ;;  %v686_v12 = vmul.f32 %v2855_v38, %v2522_v3  ;;  %1744 = vpow2.f32 %v363_v55  ;;  %v423_v37 = vmul.f32 1.442695, %v272_v8  ;;  %v2884_v8 = vld [vmem:[%s3692_s0 + $0x210] sm:$0xff] }
  0x64   :  { %v2865_v43 = vpop.eup %1734  ;;  %1746 = vpow2.f32 %v367_v36  ;;  %v447_v3 = vmul.f32 1.442695, %v284_v53  ;;  %v603_v24 = vadd.f32 %v2859_v34, %v2839_v44  ;;  %v451_v36 = vmul.f32 1.442695, %v286_v31  ;;  %v2901_v31 = vld [vmem:[%s3692_s0 + $0x350] sm:$0xff] }
  0x65   :  { %3816 = vst [vmem:[#allocation46_spill] sm:$0xff] %v2865_v43  ;;  %v2869_v13 = vpop.eup %1736  ;;  %v702_v4 = vmul.f32 %v2865_v43, %v2544_v14  ;;  %v688_v49 = vmul.f32 %v2865_v43, %v2538_v10  ;;  %1748 = vpow2.f32 %v391_v54  ;;  %v475_v53 = vmul.f32 1.442695, %v298_v57  ;;  %v2891_v54 = vld [vmem:[%s3692_s0 + $0x280] sm:$0xff] }
  0x66   :  { %3817 = vst [vmem:[#allocation47_spill] sm:$0xff] %v2869_v13  ;;  %v2875_v55 = vpop.eup %1738  ;;  %1750 = vpow2.f32 %v395_v30  ;;  %v2896_v30 = vld [vmem:[%s3692_s0 + $0x2e0] sm:$0xff]  ;;  %v503_v62 = vmul.f32 1.442695, %v312_v26  ;;  %v3822_v26 = vmax.f32 %v2730_v27, %v2740_v41 }
  0x67   :  { %3818 = vst [vmem:[#allocation48_spill] sm:$0xff] %v2875_v55  ;;  %v2886_v14 = vpop.eup %1740  ;;  %v1494_v10 = vpack.c.bf16 %v702_v4, %v700_v1  ;;  %v1542_v28 = vpack.c.bf16 %v688_v49, %v686_v12  ;;  %1752 = vpow2.f32 %v419_v45  ;;  %v342_v1 = vsub.f32 %v2712_v6, %v2799_v18  ;;  %v2912_v45 = vld [vmem:[%s3692_s0 + $0x2f0] sm:$0xff]  ;;  %v2917_v4 = vld [vmem:[%s3692_s0 + $0x360] sm:$0xff] }
  0x68   :  { %3819 = vst [vmem:[#allocation49_spill] sm:$0xff] %v2886_v14  ;;  %v2903_v33 = vpop.eup %1742  ;;  %v615_v57 = vadd.f32 %v2886_v14, %v2869_v13  ;;  %1754 = vpow2.f32 %v423_v37  ;;  %v479_v12 = vmul.f32 1.442695, %v300_v15  ;;  %v507_v6 = vmul.f32 1.442695, %v314_v51 }
  0x69   :  { %3820 = vst [vmem:[#allocation50_spill] sm:$0xff] %v2903_v33  ;;  %1495 = vmatprep.subr.bf16.mxu1 %v1494_v10  ;;  %1543 = vmatprep.subr.bf16.mxu0 %v1542_v28  ;;  %v617_v49 = vadd.f32 %v2903_v33, %v2875_v55  ;;  %1756 = vpow2.f32 %v447_v3  ;;  %v173_v15 = vmax.f32 %v2884_v8, %v2891_v54  ;;  %v2936_v3 = vld [vmem:[%s3692_s0 + $0x68] sm:$0x3]  ;;  %v2975_v55 = vld [vmem:[%s3692_s0 + $0x298] sm:$0x3] }
  0x6a   :  { %v643_v37 = vadd.f32 %v615_v57, %v601_v32  ;;  %1758 = vpow2.f32 %v451_v36  ;;  %v185_v13 = vmax.f32 %v2896_v30, %v2901_v31  ;;  %v187_v10 = vmax.f32 %v2912_v45, %v2917_v4 }
  0x6b   :  { %v645_v14 = vadd.f32 %v617_v49, %v603_v24  ;;  %1760 = vpow2.f32 %v475_v53  ;;  %v3821_v28 = vmax.f32 %v2756_v39, %v2761_v50  ;;  %v3823_v24 = vmax.f32 %v2771_v16, %v2776_v52 }
  0x6c   :  { %v657_v32 = vadd.f32 %v643_v37, %v629_v25  ;;  %1762 = vpow2.f32 %v479_v12  ;;  %v3824_v36 = vmax.f32 %v2735_v47, %v2751_v2  ;;  %v3825_v57 = vmax.f32 %v2788_v7, %v2793_v48  ;;  %v2955_v25 = vld [vmem:[%s3692_s0 + $0x148] sm:$0x3]  ;;  %v2960_v12 = vld [vmem:[%s3692_s0 + $0x1b8] sm:$0x3] }
  0x6d   :  { %v199_v51 = vmax.f32 %v3822_v26, %v3821_v28  ;;  %v2950_v28 = vld [vmem:[%s3692_s0 + $0xd8] sm:$0x3]  ;;  %v2962_v37 = vpop.eup %1744  ;;  %v659_v26 = vadd.f32 %v645_v14, %v631_v22  ;;  %1764 = vpow2.f32 %v503_v62  ;;  %v3827_v62 = vsub.f32 %v2707_v19, %v2799_v18  ;;  %v2987_v14 = vld [vmem:[%s3692_s0 + $0x308] sm:$0x3] }
  0x6e   :  { %v201_v53 = vmax.f32 %v3824_v36, %v3823_v24  ;;  %v213_v49 = vmax.f32 %v3825_v57, %v185_v13  ;;  %v3826_v13 = vsub.f32 %v2693_v23, %v2783_v17  ;;  %v215_v36 = vmax.f32 %v173_v15, %v187_v10  ;;  %v2970_v57 = vld [vmem:[%s3692_s0 + $0x228] sm:$0x3]  ;;  %v2977_v33 = vpop.eup %1746  ;;  %v2992_v15 = vld [vmem:[%s3692_s0 + $0x378] sm:$0x3] }
  0x6f   :  { %1766 = vrcp.f32 %v657_v32  ;;  %v535_v22 = vmul.f32 1.442695, %v3827_v62  ;;  %v2994_v10 = vpop.eup %1748  ;;  %v3828_v32 = vsub.f32 %v2698_v9, %v2783_v17 }
  0x70   :  { %v531_v24 = vmul.f32 1.442695, %v3826_v13  ;;  %v2982_v23 = vmax.f32 %v199_v51, %v213_v49  ;;  %1768 = vrcp.f32 %v659_v26  ;;  %v2999_v18 = vmax.f32 %v201_v53, %v215_v36  ;;  %v3001_v51 = vpop.eup %1750 }
  0x71   :  { %v559_v19 = vmul.f32 1.442695, %v3828_v32  ;;  %1770 = vpow2.f32 %v507_v6  ;;  %v563_v49 = vmul.f32 1.442695, %v342_v1  ;;  %v3007_v43 = vpop.eup %1752  ;;  %v578_v26 = vadd.f32 %v2994_v10, %v2962_v37 }
  0x72   :  { %1772 = vpow2.f32 %v531_v24  ;;  %v3015_v6 = vpop.eup %1754  ;;  %v241_v1 = vsub.f32 %v2730_v27, %v2982_v23  ;;  %v243_v53 = vsub.f32 %v2735_v47, %v2999_v18  ;;  %v255_v24 = vsub.f32 %v2740_v41, %v2982_v23 }
  0x73   :  { %1774 = vpow2.f32 %v535_v22  ;;  %v3023_v36 = vpop.eup %1756  ;;  %v580_v32 = vadd.f32 %v3001_v51, %v2977_v33  ;;  %v257_v9 = vsub.f32 %v2751_v2, %v2999_v18  ;;  %v269_v22 = vsub.f32 %v2756_v39, %v2982_v23 }
  0x74   :  { %1776 = vpow2.f32 %v559_v19  ;;  %v3031_v17 = vpop.eup %1758  ;;  %v592_v27 = vadd.f32 %v3023_v36, %v3007_v43  ;;  %v271_v47 = vsub.f32 %v2771_v16, %v2999_v18  ;;  %v283_v41 = vsub.f32 %v2761_v50, %v2982_v23 }
  0x75   :  { %1778 = vpow2.f32 %v563_v49  ;;  %v3039_v19 = vpop.eup %1760  ;;  %v285_v2 = vsub.f32 %v2776_v52, %v2999_v18  ;;  %v297_v39 = vsub.f32 %v2788_v7, %v2982_v23  ;;  %v299_v49 = vsub.f32 %v2884_v8, %v2999_v18 }
  0x76   :  { %3829 = vst [vmem:[#allocation51_spill] sm:$0xff] %v3039_v19  ;;  %v311_v13 = vsub.f32 %v2793_v48, %v2982_v23  ;;  %v3049_v62 = vpop.eup %1762  ;;  %v594_v16 = vadd.f32 %v3031_v17, %v3015_v6  ;;  %v313_v50 = vsub.f32 %v2891_v54, %v2999_v18  ;;  %v361_v38 = vmul.f32 1.442695, %v241_v1 }
  0x77   :  { %v365_v63 = vmul.f32 1.442695, %v243_v53  ;;  %v3055_v52 = vpop.eup %1764  ;;  %v325_v7 = vsub.f32 %v2896_v30, %v2982_v23  ;;  %v327_v8 = vsub.f32 %v2912_v45, %v2999_v18  ;;  %v389_v11 = vmul.f32 1.442695, %v255_v24 }
  0x78   :  { %v393_v48 = vmul.f32 1.442695, %v257_v9  ;;  %v634_v42 = vadd.f32 %v592_v27, %v578_v26  ;;  %1780 = vpow2.f32 %v361_v38  ;;  %v417_v54 = vmul.f32 1.442695, %v269_v22 }
  0x79   :  { %v3061_v60 = vpop.eup %1766  ;;  %1782 = vpow2.f32 %v365_v63  ;;  %v421_v45 = vmul.f32 1.442695, %v271_v47  ;;  %v445_v38 = vmul.f32 1.442695, %v283_v41  ;;  %v449_v63 = vmul.f32 1.442695, %v285_v2 }
  0x7a   :  { %v3065_v1 = vpop.eup %1768  ;;  %v699_v53 = vmul.f32 %v3061_v60, %v2763_v20  ;;  %v685_v30 = vmul.f32 %v3061_v60, %v2720_v5  ;;  %1784 = vpow2.f32 %v389_v11  ;;  %v606_v20 = vadd.f32 %v3055_v52, %v3039_v19 }
  0x7b   :  { %v3071_v24 = vpop.eup %1770  ;;  %v701_v26 = vmul.f32 %v3065_v1, %v2778_v56  ;;  %v687_v9 = vmul.f32 %v3065_v1, %v2742_v46  ;;  %v341_v5 = vsub.f32 %v2917_v4, %v2999_v18  ;;  %1786 = vpow2.f32 %v393_v48 }
  0x7c   :  { %v3077_v22 = vpop.eup %1772  ;;  %1788 = vpow2.f32 %v417_v54  ;;  %v473_v56 = vmul.f32 1.442695, %v297_v39  ;;  %v608_v11 = vadd.f32 %v3071_v24, %v3049_v62  ;;  %v636_v46 = vadd.f32 %v594_v16, %v580_v32  ;;  %v3102_v32 = vld [vmem:[%s3692_s0 + $0x60] sm:$0x3] }
  0x7d   :  { %v3083_v27 = vpop.eup %1774  ;;  %v1496_v47 = vpack.c.bf16 %v701_v26, %v699_v53  ;;  %v1544_v44 = vpack.c.bf16 %v687_v9, %v685_v30  ;;  %1790 = vpow2.f32 %v421_v45  ;;  %v477_v41 = vmul.f32 1.442695, %v299_v49  ;;  %v3120_v30 = vld [vmem:[%s3692_s0 + $0x140] sm:$0x3]  ;;  %v3125_v45 = vld [vmem:[%s3692_s0 + $0x1b0] sm:$0x3] }
  0x7e   :  { %3830 = vst [vmem:[#allocation52_spill] sm:$0xff] %v3083_v27  ;;  %v3085_v59 = vpop.eup %1776  ;;  %1792 = vpow2.f32 %v445_v38  ;;  %v501_v18 = vmul.f32 1.442695, %v311_v13  ;;  %v3831_v2 = vmax.f32 %v2955_v25, %v2960_v12  ;;  %v3832_v39 = vmax.f32 %v2936_v3, %v2950_v28 }
  0x7f   :  { %v3089_v19 = vpop.eup %1778  ;;  %1497 = vmatpush1.bf16.msra.mxu1 %v1496_v47  ;;  %1545 = vmatpush1.bf16.msra.mxu0 %v1544_v44  ;;  %v620_v4 = vadd.f32 %v3085_v59, %v3077_v22  ;;  %v3107_v44 = vld [vmem:[%s3692_s0 + $0xd0] sm:$0x3]  ;;  %1794 = vpow2.f32 %v449_v63  ;;  %v505_v49 = vmul.f32 1.442695, %v313_v50  ;;  %v3833_v16 = vmax.f32 %v2987_v14, %v2992_v15  ;;  %v3130_v47 = vld [vmem:[%s3692_s0 + $0x220] sm:$0x3] }
  0x80   :  { %v204_v48 = vmax.f32 %v3832_v39, %v3831_v2  ;;  %v622_v13 = vadd.f32 %v3089_v19, %v3083_v27  ;;  %v3834_v54 = vmax.f32 %v2970_v57, %v2975_v55  ;;  %1796 = vpow2.f32 %v473_v56  ;;  %v3135_v2 = vld [vmem:[%s3692_s0 + $0x290] sm:$0x3] }
  0x81   :  { %v648_v26 = vadd.f32 %v620_v4, %v606_v20  ;;  %v529_v50 = vmul.f32 1.442695, %v325_v7  ;;  %v533_v9 = vmul.f32 1.442695, %v327_v8  ;;  %1798 = vpow2.f32 %v477_v41  ;;  %v3144_v8 = vld [vmem:[%s3692_s0 + $0x300] sm:$0x3] }
  0x82   :  { %v218_v53 = vmax.f32 %v3834_v54, %v3833_v16  ;;  %v650_v38 = vadd.f32 %v622_v13, %v608_v11  ;;  %v147_v39 = vmax.f32 %v3102_v32, %v3107_v44  ;;  %v3139_v20 = vpop.eup %1780  ;;  %1800 = vpow2.f32 %v501_v18  ;;  %v3149_v56 = vld [vmem:[%s3692_s0 + $0x370] sm:$0x3] }
  0x83   :  { %v662_v7 = vadd.f32 %v648_v26, %v634_v42  ;;  %v161_v11 = vmax.f32 %v3120_v30, %v3125_v45  ;;  %v3153_v41 = vpop.eup %1782  ;;  %1802 = vpow2.f32 %v505_v49  ;;  %v3835_v16 = vsub.f32 %v2901_v31, %v2982_v23 }
  0x84   :  { %v232_v63 = vmax.f32 %v204_v48, %v218_v53  ;;  %v664_v4 = vadd.f32 %v650_v38, %v636_v46  ;;  %v3748_v48 = vmov 0.0   ;;  %v3159_v13 = vpop.eup %1784  ;;  %v561_v53 = vmul.f32 1.442695, %v341_v5 }
  0x85   :  { %784 = vmatprep.mubr.f32.mxu1 %v3748_v48  ;;  %1188 = vmatprep.mubr.f32.mxu0 %v3748_v48  ;;  %1804 = vrcp.f32 %v662_v7  ;;  %v557_v54 = vmul.f32 1.442695, %v3835_v16  ;;  %v3165_v49 = vpop.eup %1786  ;;  %v189_v26 = vmax.f32 %v3144_v8, %v3149_v56  ;;  %v203_v5 = vmax.f32 %v147_v39, %v161_v11 }
  0x86   :  { %v246_v42 = vsub.f32 %v2936_v3, %v232_v63  ;;  %v260_v18 = vsub.f32 %v2950_v28, %v232_v63  ;;  %v274_v46 = vsub.f32 %v2955_v25, %v232_v63  ;;  %1806 = vrcp.f32 %v664_v4  ;;  %v3172_v38 = vpop.eup %1788 }
  0x87   :  { %v288_v3 = vsub.f32 %v2960_v12, %v232_v63  ;;  %v175_v28 = vmax.f32 %v3130_v47, %v3135_v2  ;;  %3836 = vst [vmem:[#allocation53_spill] sm:$0xff] %v3172_v38  ;;  %1808 = vpow2.f32 %v529_v50  ;;  %v302_v31 = vsub.f32 %v2970_v57, %v232_v63  ;;  %v3175_v7 = vpop.eup %1790 }
  0x88   :  { %v371_v23 = vmul.f32 1.442695, %v246_v42  ;;  %3837 = vst [vmem:[#allocation54_spill] sm:$0xff] %v3175_v7  ;;  %1810 = vpow2.f32 %v533_v9  ;;  %v316_v25 = vsub.f32 %v2975_v55, %v232_v63  ;;  %v330_v12 = vsub.f32 %v2987_v14, %v232_v63  ;;  %v3179_v16 = vpop.eup %1792 }
  0x89   :  { %v399_v4 = vmul.f32 1.442695, %v260_v18  ;;  %1812 = vpow2.f32 %v557_v54  ;;  %v577_v48 = vadd.f32 %v3159_v13, %v3139_v20  ;;  %v344_v50 = vsub.f32 %v2992_v15, %v232_v63  ;;  %v3184_v57 = vpop.eup %1794 }
  0x8a   :  { %v427_v27 = vmul.f32 1.442695, %v274_v46  ;;  %3838 = vst [vmem:[#allocation55_spill] sm:$0xff] %v3184_v57  ;;  %1814 = vpow2.f32 %v561_v53  ;;  %v591_v9 = vadd.f32 %v3179_v16, %v3172_v38  ;;  %v455_v39 = vmul.f32 1.442695, %v288_v3  ;;  %v3188_v11 = vpop.eup %1796 }
  0x8b   :  { %v217_v55 = vmax.f32 %v175_v28, %v189_v26  ;;  %v579_v14 = vadd.f32 %v3165_v49, %v3153_v41  ;;  %1816 = vpow2.f32 %v371_v23  ;;  %v483_v42 = vmul.f32 1.442695, %v302_v31  ;;  %v3192_v18 = vpop.eup %1798 }
  0x8c   :  { %1818 = vpow2.f32 %v399_v4  ;;  %v511_v15 = vmul.f32 1.442695, %v316_v25  ;;  %v539_v63 = vmul.f32 1.442695, %v330_v12  ;;  %v3194_v46 = vpop.eup %1800  ;;  %v593_v53 = vadd.f32 %v3184_v57, %v3175_v7 }
  0x8d   :  { %v231_v54 = vmax.f32 %v203_v5, %v217_v55  ;;  %v633_v3 = vadd.f32 %v591_v9, %v577_v48  ;;  %1820 = vpow2.f32 %v427_v27  ;;  %v567_v28 = vmul.f32 1.442695, %v344_v50  ;;  %v3198_v26 = vpop.eup %1802 }
  0x8e   :  { %v605_v23 = vadd.f32 %v3194_v46, %v3188_v11  ;;  %1822 = vpow2.f32 %v455_v39  ;;  %v607_v5 = vadd.f32 %v3198_v26, %v3192_v18 }
  0x8f   :  { %v245_v31 = vsub.f32 %v3102_v32, %v231_v54  ;;  %v259_v25 = vsub.f32 %v3107_v44, %v231_v54  ;;  %v3204_v12 = vpop.eup %1804  ;;  %1824 = vpow2.f32 %v483_v42  ;;  %v273_v48 = vsub.f32 %v3120_v30, %v231_v54 }
  0x90   :  { %v287_v27 = vsub.f32 %v3125_v45, %v231_v54  ;;  %v3210_v4 = vpop.eup %1806  ;;  %v704_v50 = vmul.f32 %v3204_v12, %v2994_v10  ;;  %v690_v32 = vmul.f32 %v3204_v12, %v2962_v37  ;;  %1826 = vpow2.f32 %v511_v15 }
  0x91   :  { %v301_v44 = vsub.f32 %v3130_v47, %v231_v54  ;;  %v3217_v9 = vpop.eup %1808  ;;  %v706_v39 = vmul.f32 %v3210_v4, %v3001_v51  ;;  %v692_v30 = vmul.f32 %v3210_v4, %v2977_v33  ;;  %1828 = vpow2.f32 %v539_v63 }
  0x92   :  { %v315_v45 = vsub.f32 %v3135_v2, %v231_v54  ;;  %v3224_v55 = vpop.eup %1810  ;;  %1830 = vpow2.f32 %v567_v28  ;;  %v329_v10 = vsub.f32 %v3144_v8, %v231_v54  ;;  %v343_v37 = vsub.f32 %v3149_v56, %v231_v54 }
  0x93   :  { %v369_v42 = vmul.f32 1.442695, %v245_v31  ;;  %v3228_v47 = vpop.eup %1812  ;;  %v1498_v15 = vpack.c.bf16 %v706_v39, %v704_v50  ;;  %v1546_v7 = vpack.c.bf16 %v692_v30, %v690_v32  ;;  %v397_v38 = vmul.f32 1.442695, %v259_v25 }
  0x94   :  { %v425_v51 = vmul.f32 1.442695, %v273_v48  ;;  %v3230_v57 = vpop.eup %1814  ;;  %v619_v33 = vadd.f32 %v3228_v47, %v3217_v9  ;;  %v453_v2 = vmul.f32 1.442695, %v287_v27  ;;  %v481_v63 = vmul.f32 1.442695, %v301_v44 }
  0x95   :  { %1832 = vpow2.f32 %v369_v42  ;;  %v3234_v28 = vpop.eup %1816  ;;  %1499 = vmatprep.subr.bf16.mxu1 %v1498_v15  ;;  %1547 = vmatprep.subr.bf16.mxu0 %v1546_v7  ;;  %v621_v8 = vadd.f32 %v3230_v57, %v3224_v55  ;;  %v635_v56 = vadd.f32 %v593_v53, %v579_v14  ;;  %v509_v54 = vmul.f32 1.442695, %v315_v45 }
  0x96   :  { %1834 = vpow2.f32 %v397_v38  ;;  %v3238_v31 = vpop.eup %1818  ;;  %v647_v25 = vadd.f32 %v619_v33, %v605_v23  ;;  %v537_v44 = vmul.f32 1.442695, %v329_v10  ;;  %v565_v7 = vmul.f32 1.442695, %v343_v37 }
  0x97   :  { %1836 = vpow2.f32 %v425_v51  ;;  %v3240_v48 = vpop.eup %1820  ;;  %v649_v50 = vadd.f32 %v621_v8, %v607_v5  ;;  %v582_v38 = vadd.f32 %v3238_v31, %v3234_v28  ;;  %v3262_v37 = vmul.f32 %v3061_v60, %v2813_v58 }
  0x98   :  { %1838 = vpow2.f32 %v453_v2  ;;  %v3242_v27 = vpop.eup %1822  ;;  %v661_v32 = vadd.f32 %v647_v25, %v633_v3  ;;  %v3268_v15 = vmul.f32 %v3065_v1, %v2821_v40  ;;  %v3272_v51 = vmul.f32 %v3061_v60, %v2797_v61 }
  0x99   :  { %1840 = vpow2.f32 %v481_v63  ;;  %v3244_v39 = vpop.eup %1824  ;;  %v663_v30 = vadd.f32 %v649_v50, %v635_v56  ;;  %v596_v14 = vadd.f32 %v3242_v27, %v3240_v48  ;;  %v3276_v33 = vmul.f32 %v3065_v1, %v2805_v29 }
  0x9a   :  { %1842 = vpow2.f32 %v509_v54  ;;  %v3250_v53 = vpop.eup %1826  ;;  %v3282_v58 = vmul.f32 %v3204_v12, %v3023_v36  ;;  %v3286_v8 = vmul.f32 %v3210_v4, %v3031_v17  ;;  %v3290_v40 = vmul.f32 %v3204_v12, %v3007_v43 }
  0x9b   :  { %1844 = vrcp.f32 %v661_v32  ;;  %v3252_v23 = vpop.eup %1828  ;;  %v610_v3 = vadd.f32 %v3250_v53, %v3244_v39  ;;  %v638_v10 = vadd.f32 %v596_v14, %v582_v38  ;;  %v3300_v36 = vmul.f32 %v3210_v4, %v3015_v6 }
  0x9c   :  { %3839 = vst [vmem:[#allocation56_spill] sm:$0xff] %v3252_v23  ;;  %1846 = vrcp.f32 %v663_v30  ;;  %v3256_v5 = vpop.eup %1830 }
  0x9d   :  { %3840 = vst [vmem:[#allocation57_spill] sm:$0xff] %v3256_v5  ;;  %1848 = vpow2.f32 %v537_v44  ;;  %v624_v45 = vadd.f32 %v3256_v5, %v3252_v23  ;;  %v3862_v23 = vld [vmem:[#allocation16_spill] sm:$0xff] }
  0x9e   :  { %1850 = vpow2.f32 %v565_v7 }
  0x9f   :  { %v3264_v42 = vpop.eup %1832  ;;  %v652_v63 = vadd.f32 %v624_v45, %v610_v3 }
  0xa0   :  { %v3278_v2 = vpop.eup %1834 }
  0xa1   :  { %v3292_v61 = vpop.eup %1836  ;;  %v666_v17 = vadd.f32 %v652_v63, %v638_v10  ;;  %v581_v6 = vadd.f32 %v3278_v2, %v3264_v42 }
  0xa2   :  { %v3302_v54 = vpop.eup %1838 }
  0xa3   :  { %v3306_v43 = vpop.eup %1840  ;;  %1852 = vrcp.f32 %v666_v17  ;;  %v595_v7 = vadd.f32 %v3302_v54, %v3292_v61 }
  0xa4   :  { %3841 = vst [vmem:[#allocation58_spill] sm:$0xff] %v3306_v43  ;;  %v3310_v32 = vpop.eup %1842 }
  0xa5   :  { %3842 = vst [vmem:[#allocation59_spill] sm:$0xff] %v3310_v32  ;;  %v3312_v44 = vpop.eup %1844  ;;  %v609_v63 = vadd.f32 %v3310_v32, %v3306_v43  ;;  %v637_v56 = vadd.f32 %v595_v7, %v581_v6  ;;  %v3845_v6 = vld [vmem:[#allocation43_spill] sm:$0xff] }
  0xa6   :  { %v3318_v30 = vpop.eup %1846  ;;  %v703_v38 = vmul.f32 %v3312_v44, %v3159_v13  ;;  %v689_v14 = vmul.f32 %v3312_v44, %v3139_v20  ;;  %v1441_v20 = vld [vmem:[%s3694_s2] sm:$0xff]  ;;  %v3353_v7 = vmul.f32 %v3061_v60, %v3845_v6 }
  0xa7   :  { %v3324_v3 = vpop.eup %1848  ;;  %v705_v45 = vmul.f32 %v3318_v30, %v3165_v49  ;;  %v691_v10 = vmul.f32 %v3318_v30, %v3153_v41  ;;  %v3341_v41 = vmul.f32 %v2500_v0, %v2257_v35  ;;  %v3361_v35 = vmul.f32 %v3204_v12, %v3055_v52  ;;  %v3849_v6 = vld [vmem:[#allocation51_spill] sm:$0xff]  ;;  %v3854_v52 = vld [vmem:[#allocation6_spill] sm:$0xff] }
  0xa8   :  { %3843 = vst [vmem:[#allocation60_spill] sm:$0xff] %v3324_v3  ;;  %v3332_v17 = vpop.eup %1850  ;;  %v3371_v29 = vmul.f32 %v3204_v12, %v3849_v6  ;;  %v3864_v32 = vld [vmem:[#allocation31_spill] sm:$0xff] }
  0xa9   :  { %3844 = vst [vmem:[#allocation61_spill] sm:$0xff] %v3332_v17  ;;  %v1500_v50 = vpack.c.bf16 %v705_v45, %v703_v38  ;;  %v1548_v25 = vpack.c.bf16 %v691_v10, %v689_v14  ;;  %v623_v13 = vadd.f32 %v3332_v17, %v3324_v3  ;;  %v3345_v38 = vmul.f32 %v3061_v60, %v2849_v21  ;;  %v3846_v45 = vld [vmem:[#allocation44_spill] sm:$0xff]  ;;  %v3847_v10 = vld [vmem:[#allocation7_spill] sm:$0xff]  ;;  %v3861_v17 = vld [vmem:[#allocation41_spill] sm:$0xff] }
  0xaa   :  { %v3349_v14 = vmul.f32 %v3065_v1, %v2859_v34  ;;  %v3367_v34 = vmul.f32 %v3210_v4, %v3071_v24  ;;  %3850 = vst [vmem:[#allocation43_spill] sm:$0xff] %v3371_v29  ;;  %v3385_v24 = vmul.f32 %v3312_v44, %v3194_v46  ;;  %v3401_v3 = vmul.f32 %v3318_v30, %v3198_v26  ;;  %v3859_v46 = vld [vmem:[#allocation38_spill] sm:$0xff]  ;;  %v3873_v29 = vld [vmem:[#allocation48_spill] sm:$0xff] }
  0xab   :  { %1501 = vmatpush1.bf16.msra.mxu1 %v1500_v50  ;;  %1549 = vmatpush1.bf16.msra.mxu0 %v1548_v25  ;;  %v651_v49 = vadd.f32 %v623_v13, %v609_v63  ;;  %v3357_v25 = vmul.f32 %v3065_v1, %v3846_v45  ;;  %v1881_v50 = vmov 0   ;;  %v3848_v63 = vld [vmem:[#allocation27_spill] sm:$0xff]  ;;  %v791_v5 = vmul.f32 %v3859_v46, %v3862_v23  ;;  %v3871_v23 = vld [vmem:[#allocation50_spill] sm:$0xff] }
  0xac   :  { %1603 = vset.pattern.permute.xlu0 %v1881_v50  ;;  %v808_v13 = vmul.f32 %v3848_v63, %v3847_v10  ;;  %3852 = vst [vmem:[#allocation7_spill] sm:$0xff] %v3385_v24  ;;  %v3853_v10 = vld [vmem:[#allocation5_spill] sm:$0xff]  ;;  %3855 = vst [vmem:[#allocation27_spill] sm:$0xff] %v3401_v3  ;;  %v3866_v3 = vld [vmem:[#allocation32_spill] sm:$0xff] }
  0xad   :  { %v665_v21 = vadd.f32 %v651_v49, %v637_v56  ;;  %1444 = vperm.xlu0 %1603, %v1441_v20   ;;  %v3373_v45 = vpop.eup %1852  ;;  %v3381_v49 = vmul.f32 %v3210_v4, %v3049_v62  ;;  %v792_v6 = vmul.f32 %v2500_v0, %v3853_v10  ;;  %v794_v56 = vmul.f32 %v3848_v63, %v3854_v52  ;;  %v3860_v62 = vld [vmem:[#allocation19_spill] sm:$0xff]  ;;  %v3867_v52 = vld [vmem:[#allocation46_spill] sm:$0xff] }
  0xae   :  { %v708_v50 = vmul.f32 %v3373_v45, %v3238_v31  ;;  %v694_v20 = vmul.f32 %v3373_v45, %v3234_v28  ;;  %v3407_v28 = vmul.f32 %v3312_v44, %v3188_v11  ;;  %v3411_v31 = vmul.f32 %v3318_v30, %v3192_v18  ;;  %v3863_v18 = vld [vmem:[#allocation17_spill] sm:$0xff] }
  0xaf   :  { %3851 = vst [vmem:[#allocation44_spill] sm:$0xff] %v3381_v49  ;;  %1854 = vrcp.f32 %v665_v21  ;;  %v1502_v26 = vpack.c.bf16 %v808_v13, %v3341_v41  ;;  %v1550_v10 = vpack.c.bf16 %v794_v56, %v792_v6  ;;  %v807_v11 = vmul.f32 %v3861_v17, %v3860_v62  ;;  %v3865_v21 = vld [vmem:[#allocation45_spill] sm:$0xff]  ;;  %v3870_v62 = vld [vmem:[#allocation30_spill] sm:$0xff] }
  0xb0   :  { %1466 = vmatprep.subr.msk.mxu1 %vm713_vm0, %v708_v50  ;;  %1478 = vmatprep.subr.msk.mxu0 %vm713_vm0, %v694_v20  ;;  %3856 = vst [vmem:[#allocation51_spill] sm:$0xff] %v3407_v28  ;;  %3857 = vst [vmem:[#allocation5_spill] sm:$0xff] %v3411_v31  ;;  %v3858_v50 = vld [vmem:[#allocation18_spill] sm:$0xff]  ;;  %v793_v43 = vmul.f32 %v3861_v17, %v3863_v18  ;;  %v810_v24 = vmul.f32 %v3865_v21, %v3864_v32  ;;  %v3868_v41 = vld [vmem:[#allocation29_spill] sm:$0xff] }
  0xb1   :  { %v805_v20 = vmul.f32 %v3859_v46, %v3858_v50  ;;  %v812_v28 = vmul.f32 %v3867_v52, %v3866_v3  ;;  %v796_v13 = vmul.f32 %v3865_v21, %v3868_v41  ;;  %v3869_v56 = vld [vmem:[#allocation49_spill] sm:$0xff]  ;;  %v798_v50 = vmul.f32 %v3867_v52, %v3870_v62  ;;  %v3872_v18 = vld [vmem:[#allocation47_spill] sm:$0xff] }
  0xb2   :  { %v3434_v6 = vmul.f32 %v3061_v60, %v3869_v56  ;;  %v3440_v31 = vmul.f32 %v3065_v1, %v3871_v23  ;;  %v3444_v32 = vmul.f32 %v3061_v60, %v3872_v18  ;;  %v3448_v3 = vmul.f32 %v3065_v1, %v3873_v29  ;;  %v3874_v29 = vld [vmem:[#allocation52_spill] sm:$0xff] }
  0xb3   :  { %v3452_v41 = vmul.f32 %v3204_v12, %v3085_v59  ;;  %v3456_v56 = vmul.f32 %v3210_v4, %v3089_v19  ;;  %v3460_v62 = vmul.f32 %v3204_v12, %v3077_v22  ;;  %v3470_v59 = vmul.f32 %v3210_v4, %v3874_v29  ;;  %v128_v1 = vld [vmem:[%s3693_s1 + $0x8] sm:$0xff]  ;;  %v127_v4 = vld [vmem:[%s3693_s1] sm:$0xff] }
  0xb4   :  { %v3474_v19 = vmul.f32 %v3312_v44, %v3228_v47  ;;  %v1504_v18 = vpack.c.bf16 %v807_v11, %v805_v20  ;;  %v1552_v49 = vpack.c.bf16 %v793_v43, %v791_v5  ;;  %v1506_v29 = vpack.c.bf16 %v812_v28, %v810_v24  ;;  %v3875_v28 = vld [vmem:[#allocation55_spill] sm:$0xff]  ;;  %v3877_v20 = vld [vmem:[#allocation54_spill] sm:$0xff] }
  0xb5   :  { %v1554_v60 = vpack.c.bf16 %v798_v50, %v796_v13  ;;  %v1534_v47 = vpack.c.bf16 %v3456_v56, %v3452_v41  ;;  %v3494_v5 = vmul.f32 %v3318_v30, %v3230_v57  ;;  %v3502_v43 = vmul.f32 %v3318_v30, %v3224_v55  ;;  %v3879_v13 = vld [vmem:[#allocation10_spill] sm:$0xff]  ;;  %v133_v41 = vld [vmem:[%s3693_s1 + $0x30] sm:$0xff] }
  0xb6   :  { %v813_v24 = vmul.f32 %v3312_v44, %v3179_v16  ;;  %v815_v55 = vmul.f32 %v3318_v30, %v3875_v28  ;;  %v801_v11 = vmul.f32 %v3318_v30, %v3877_v20  ;;  %v3878_v16 = vmov 0.0   ;;  %v3892_v20 = vld [vmem:[#allocation36_spill] sm:$0xff] }
  0xb7   :  { %v1536_v57 = vpack.c.bf16 %v3494_v5, %v3474_v19  ;;  %v914_v50 = vmul.f32 %v2500_v0, %v3879_v13 }
  0xb8   :  { %v1512_v30 = vpack.c.bf16 %v815_v55, %v813_v24  ;;  %v3887_v24 = vld [vmem:[#allocation22_spill] sm:$0xff]  ;;  %v3888_v55 = vld [vmem:[#allocation23_spill] sm:$0xff] }
  0xb9   :  { %v3462_v23 = vpop.eup %1854  ;;  %v913_v28 = vmul.f32 %v3859_v46, %v3887_v24 }
  0xba   :  { %v707_v22 = vmul.f32 %v3462_v23, %v3278_v2  ;;  %v693_v12 = vmul.f32 %v3462_v23, %v3264_v42  ;;  %v1582_v2 = vpack.c.bf16 %v3470_v59, %v3460_v62  ;;  %v3498_v42 = vmul.f32 %v3312_v44, %v3217_v9 }
  0xbc   :  { %1467 = vmatpush1.msk.msra.mxu1 %vm713_vm0, %v707_v22  ;;  %1479 = vmatpush1.msk.msra.mxu0 %vm713_vm0, %v693_v12  ;;  %v1584_v9 = vpack.c.bf16 %v3502_v43, %v3498_v42  ;;  %v3881_v22 = vpack.c.bf16 %v3268_v15, %v3262_v37  ;;  %v3883_v12 = vld [vmem:[#allocation8_spill] sm:$0xff]  ;;  %v818_v37 = vmul.f32 %v3373_v45, %v3242_v27 }
  0xbd   :  { %1503 = vmatprep.subr.bf16.mxu1 %v1502_v26  ;;  %1551 = vmatprep.subr.bf16.mxu0 %v1550_v10  ;;  %v3876_v26 = vld [vmem:[#allocation53_spill] sm:$0xff]  ;;  %v804_v15 = vmul.f32 %v3373_v45, %v3240_v48  ;;  %v920_v48 = vmul.f32 %v3867_v52, %v3892_v20 }
  0xbe   :  { %1468 = vmatmul.mubr.msk.f32.vlgmr.msra.gmra.mrb[0].mxu1 %vm709_vm1, %v128_v1  ;;  %1480 = vmatmul.mubr.msk.f32.vlgmr.msra.gmra.mrb[0].mxu0 %vm709_vm1, %v127_v4  ;;  %v799_v10 = vmul.f32 %v3312_v44, %v3876_v26  ;;  %v3880_v1 = vld [vmem:[#allocation11_spill] sm:$0xff]  ;;  %v3882_v44 = vpack.c.bf16 %v3276_v33, %v3272_v51  ;;  %v3884_v4 = vpack.c.bf16 %v3286_v8, %v3282_v58  ;;  %v3886_v51 = vld [vmem:[#allocation9_spill] sm:$0xff]  ;;  %v3889_v8 = vld [vmem:[#allocation20_spill] sm:$0xff] }
  0xbf   :  { %1505 = vmatpush1.bf16.msra.mxu1 %v1504_v18  ;;  %1553 = vmatpush1.bf16.msra.mxu0 %v1552_v49  ;;  %v916_v49 = vmul.f32 %v3848_v63, %v3880_v1  ;;  %v900_v18 = vmul.f32 %v2500_v0, %v3883_v12  ;;  %v902_v33 = vmul.f32 %v3848_v63, %v3886_v51 }
  0xc0   :  { %1507 = vmatprep.subr.bf16.mxu1 %v1506_v29  ;;  %1555 = vmatprep.subr.bf16.mxu0 %v1554_v60  ;;  %v1560_v60 = vpack.c.bf16 %v801_v11, %v799_v10  ;;  %v3885_v29 = vpack.c.bf16 %v3300_v36, %v3290_v40  ;;  %v915_v58 = vmul.f32 %v3861_v17, %v3888_v55  ;;  %v3890_v40 = vld [vmem:[#allocation21_spill] sm:$0xff]  ;;  %v3891_v10 = vld [vmem:[#allocation35_spill] sm:$0xff]  ;;  %v3899_v55 = vld [vmem:[#allocation44_spill] sm:$0xff] }
  0xc1   :  { %892 = vmatprep.mubr.f32.mxu1 %v3878_v16  ;;  %1268 = vmatprep.mubr.f32.mxu0 %v3878_v16  ;;  %v899_v26 = vmul.f32 %v3859_v46, %v3889_v8  ;;  %v901_v36 = vmul.f32 %v3861_v17, %v3890_v40  ;;  %v918_v27 = vmul.f32 %v3865_v21, %v3891_v10  ;;  %v3893_v11 = vld [vmem:[#allocation33_spill] sm:$0xff] }
  0xc2   :  { %v904_v13 = vmul.f32 %v3865_v21, %v3893_v11  ;;  %v817_v1 = vmul.f32 %v3462_v23, %v3302_v54  ;;  %v129_v54 = vld [vmem:[%s3693_s1 + $0x10] sm:$0xff] }
  0xc3   :  { %1509 = vmatpush1.bf16.msra.mxu1 %v3881_v22  ;;  %1557 = vmatpush1.bf16.msra.mxu0 %v3882_v44  ;;  %v803_v22 = vmul.f32 %v3462_v23, %v3292_v61  ;;  %v3894_v44 = vld [vmem:[#allocation34_spill] sm:$0xff]  ;;  %v1564_v51 = vpack.c.bf16 %v901_v36, %v899_v26  ;;  %v1518_v61 = vpack.c.bf16 %v920_v48, %v918_v27  ;;  %v3904_v8 = vld [vmem:[#allocation13_spill] sm:$0xff]  ;;  %v3906_v36 = vld [vmem:[#allocation28_spill] sm:$0xff] }
  0xc4   :  { %1511 = vmatprep.subr.bf16.mxu1 %v3884_v4  ;;  %1559 = vmatprep.subr.bf16.mxu0 %v3885_v29  ;;  %v906_v12 = vmul.f32 %v3867_v52, %v3894_v44  ;;  %v1514_v4 = vpack.c.bf16 %v916_v49, %v914_v50  ;;  %v1562_v29 = vpack.c.bf16 %v902_v33, %v900_v18  ;;  %v3897_v33 = vld [vmem:[#allocation14_spill] sm:$0xff]  ;;  %v3908_v27 = vld [vmem:[#allocation25_spill] sm:$0xff]  ;;  %v3909_v48 = vld [vmem:[#allocation40_spill] sm:$0xff] }
  0xc5   :  { %v3895_v50 = vpack.c.bf16 %v3349_v14, %v3345_v38  ;;  %v3896_v49 = vpack.c.bf16 %v3357_v25, %v3353_v7  ;;  %v926_v18 = vmul.f32 %v3373_v45, %v3250_v53  ;;  %v1022_v24 = vmul.f32 %v2500_v0, %v3897_v33  ;;  %v3900_v38 = vld [vmem:[#allocation43_spill] sm:$0xff]  ;;  %v3903_v25 = vld [vmem:[#allocation12_spill] sm:$0xff]  ;;  %v3905_v26 = vld [vmem:[#allocation26_spill] sm:$0xff] }
  0xc6   :  { %v3901_v14 = vpack.c.bf16 %v3899_v55, %v3900_v38  ;;  %v1008_v53 = vmul.f32 %v2500_v0, %v3903_v25  ;;  %v1021_v40 = vmul.f32 %v3859_v46, %v3905_v26  ;;  %v1009_v20 = vmul.f32 %v3861_v17, %v3908_v27  ;;  %v3913_v44 = vld [vmem:[#allocation7_spill] sm:$0xff]  ;;  %v3923_v55 = vld [vmem:[#allocation57_spill] sm:$0xff] }
  0xc7   :  { %1513 = vmatpush1.bf16.msra.mxu1 %v1512_v30  ;;  %1561 = vmatpush1.bf16.msra.mxu0 %v1560_v60  ;;  %v130_v30 = vld [vmem:[%s3693_s1 + $0x18] sm:$0xff]  ;;  %v1516_v60 = vpack.c.bf16 %v915_v58, %v913_v28  ;;  %v3898_v28 = vpack.c.bf16 %v3367_v34, %v3361_v35  ;;  %v3902_v58 = vld [vmem:[#allocation15_spill] sm:$0xff]  ;;  %v1023_v35 = vmul.f32 %v3861_v17, %v3906_v36  ;;  %v3907_v34 = vld [vmem:[#allocation24_spill] sm:$0xff] }
  0xc8   :  { %1469 = vmatprep.subr.msk.mxu1 %vm713_vm0, %v818_v37  ;;  %1481 = vmatprep.subr.msk.mxu0 %vm713_vm0, %v804_v15  ;;  %v1566_v37 = vpack.c.bf16 %v906_v12, %v904_v13  ;;  %v912_v15 = vmul.f32 %v3373_v45, %v3244_v39  ;;  %v1024_v7 = vmul.f32 %v3848_v63, %v3902_v58  ;;  %v3910_v13 = vld [vmem:[#allocation42_spill] sm:$0xff]  ;;  %v131_v33 = vld [vmem:[%s3693_s1 + $0x20] sm:$0xff] }
  0xc9   :  { %v1010_v39 = vmul.f32 %v3848_v63, %v3904_v8  ;;  %v1007_v10 = vmul.f32 %v3859_v46, %v3907_v34  ;;  %v1026_v11 = vmul.f32 %v3865_v21, %v3909_v48  ;;  %v1028_v0 = vmul.f32 %v3867_v52, %v3910_v13  ;;  %v3918_v46 = vld [vmem:[#allocation59_spill] sm:$0xff] }
  0xca   :  { %v925_v17 = vmul.f32 %v3462_v23, %v3918_v46  ;;  %v1034_v38 = vmul.f32 %v3373_v45, %v3923_v55 }
  0xcb   :  { %1470 = vmatpush1.msk.msra.mxu1 %vm713_vm0, %v817_v1  ;;  %1482 = vmatpush1.msk.msra.mxu0 %vm713_vm0, %v803_v22  ;;  %v3911_v1 = vld [vmem:[#allocation37_spill] sm:$0xff]  ;;  %v3912_v22 = vld [vmem:[#allocation27_spill] sm:$0xff] }
  0xcc   :  { %1515 = vmatprep.subr.bf16.mxu1 %v1514_v4  ;;  %1563 = vmatprep.subr.bf16.mxu0 %v1562_v29  ;;  %v1012_v63 = vmul.f32 %v3865_v21, %v3911_v1  ;;  %v3914_v12 = vpack.c.bf16 %v3912_v22, %v3913_v44  ;;  %v3915_v4 = vld [vmem:[#allocation5_spill] sm:$0xff]  ;;  %v3916_v29 = vld [vmem:[#allocation51_spill] sm:$0xff]  ;;  %v1526_v21 = vpack.c.bf16 %v1024_v7, %v1022_v24 }
  0xcd   :  { %1471 = vmatmul.mubr.msk.f32.vlgmr.msra.gmra.mrb[0].mxu1 %vm709_vm1, %v130_v30  ;;  %1483 = vmatmul.mubr.msk.f32.vlgmr.msra.gmra.mrb[0].mxu0 %vm709_vm1, %v129_v54  ;;  %v3917_v30 = vpack.c.bf16 %v3915_v4, %v3916_v29  ;;  %v3922_v24 = vpack.c.bf16 %v3448_v3, %v3444_v32  ;;  %v3926_v32 = vld [vmem:[#allocation60_spill] sm:$0xff] }
  0xce   :  { %1517 = vmatpush1.bf16.msra.mxu1 %v1516_v60  ;;  %1565 = vmatpush1.bf16.msra.mxu0 %v1564_v51  ;;  %v3919_v60 = vld [vmem:[#allocation58_spill] sm:$0xff]  ;;  %v3920_v51 = vld [vmem:[#allocation39_spill] sm:$0xff]  ;;  %v1019_v3 = vmul.f32 %v3462_v23, %v3926_v32 }
  0xcf   :  { %1519 = vmatprep.subr.bf16.mxu1 %v1518_v61  ;;  %1567 = vmatprep.subr.bf16.mxu0 %v1566_v37  ;;  %v911_v54 = vmul.f32 %v3462_v23, %v3919_v60  ;;  %v1014_v61 = vmul.f32 %v3867_v52, %v3920_v51  ;;  %v1574_v37 = vpack.c.bf16 %v1010_v39, %v1008_v53 }
  0xd0   :  { %1000 = vmatprep.mubr.f32.mxu1 %v3878_v16  ;;  %1348 = vmatprep.mubr.f32.mxu0 %v3878_v16  ;;  %v1530_v52 = vpack.c.bf16 %v1028_v0, %v1026_v11 }
  0xd2   :  { %1521 = vmatpush1.bf16.msra.mxu1 %v3895_v50  ;;  %1569 = vmatpush1.bf16.msra.mxu0 %v3896_v49  ;;  %v132_v50 = vld [vmem:[%s3693_s1 + $0x28] sm:$0xff]  ;;  %v1528_v49 = vpack.c.bf16 %v1023_v35, %v1021_v40 }
  0xd3   :  { %1523 = vmatprep.subr.bf16.mxu1 %v3898_v28  ;;  %1571 = vmatprep.subr.bf16.mxu0 %v3901_v14  ;;  %v1576_v28 = vpack.c.bf16 %v1009_v20, %v1007_v10 }
  0xd6   :  { %1525 = vmatpush1.bf16.msra.mxu1 %v3914_v12  ;;  %1573 = vmatpush1.bf16.msra.mxu0 %v3917_v30 }
  0xd7   :  { %1472 = vmatprep.subr.msk.mxu1 %vm713_vm0, %v926_v18  ;;  %1484 = vmatprep.subr.msk.mxu0 %vm713_vm0, %v912_v15  ;;  %v1578_v18 = vpack.c.bf16 %v1014_v61, %v1012_v63  ;;  %v3921_v15 = vpack.c.bf16 %v3440_v31, %v3434_v6  ;;  %v3925_v31 = vld [vmem:[#allocation61_spill] sm:$0xff] }
  0xd8   :  { %v1033_v6 = vmul.f32 %v3462_v23, %v3925_v31 }
  0xda   :  { %1473 = vmatpush1.msk.msra.mxu1 %vm713_vm0, %v925_v17  ;;  %1485 = vmatpush1.msk.msra.mxu0 %vm713_vm0, %v911_v54 }
  0xdb   :  { %1527 = vmatprep.subr.bf16.mxu1 %v1526_v21  ;;  %1575 = vmatprep.subr.bf16.mxu0 %v1574_v37 }
  0xdc   :  { %1474 = vmatmul.mubr.msk.f32.vlgmr.msra.gmra.mrb[0].mxu1 %vm709_vm1, %v132_v50  ;;  %1486 = vmatmul.mubr.msk.f32.vlgmr.msra.gmra.mrb[0].mxu0 %vm709_vm1, %v131_v33 }
  0xdd   :  { %1529 = vmatpush1.bf16.msra.mxu1 %v1528_v49  ;;  %1577 = vmatpush1.bf16.msra.mxu0 %v1576_v28 }
  0xde   :  { %1531 = vmatprep.subr.bf16.mxu1 %v1530_v52  ;;  %1579 = vmatprep.subr.bf16.mxu0 %v1578_v18 }
  0xdf   :  { %1108 = vmatprep.mubr.f32.mxu1 %v3878_v16  ;;  %1428 = vmatprep.mubr.f32.mxu0 %v3878_v16  ;;  %v3924_v16 = vld [vmem:[#allocation56_spill] sm:$0xff] }
  0xe0   :  { %v1020_v14 = vmul.f32 %v3373_v45, %v3924_v16  ;;  %v134_v45 = vld [vmem:[%s3693_s1 + $0x38] sm:$0xff]  ;;  %s1856_s1 = scalar_lea.vmem %s1459_s10, 256 }
  0xe1   :  { %1533 = vmatpush1.bf16.msra.mxu1 %v3921_v15  ;;  %1581 = vmatpush1.bf16.msra.mxu0 %v3922_v24  ;;  %p1857_p0 = scmp.ne.s32.totalorder %s1459_s10, %s1856_s1  ;;  %p1862_p2 = scmp.lt.s32.totalorder %s1856_s1, %s1856_s1 }
  0xe2   :  { %1535 = vmatprep.subr.bf16.mxu1 %v1534_v47  ;;  %1583 = vmatprep.subr.bf16.mxu0 %v1582_v2 }
  0xe3   :  { %p1863_p3 = por %p1862_p2, %p1861_p1 }
  0xe5   :  { %1537 = vmatpush1.bf16.msra.mxu1 %v1536_v57  ;;  %1585 = vmatpush1.bf16.msra.mxu0 %v1584_v9  ;;  %p1864_p4 = pnand %p1863_p3, %p1857_p0 }
  0xe6   :  { %1475 = vmatprep.subr.msk.mxu1 %vm713_vm0, %v1034_v38  ;;  %1487 = vmatprep.subr.msk.mxu0 %vm713_vm0, %v1020_v14 }
  0xe9   :  { %1476 = vmatpush1.msk.msra.mxu1 %vm713_vm0, %v1033_v6  ;;  %1488 = vmatpush1.msk.msra.mxu0 %vm713_vm0, %v1019_v3 }
  0xea   :  { %1477 = vmatmul.mubr.msk.f32.vlgmr.msra.gmra.mrb[0].mxu1 %vm709_vm1, %v134_v45  ;;  %1489 = vmatmul.mubr.msk.f32.vlgmr.msra.gmra.mrb[0].mxu0 %vm709_vm1, %v133_v41 }
 0x12c   :  { %v1445_v56 = vpop.permute.xlu0 %1444 }
 0x1bd   :  { %v1110_v62 = vpop.f32.mrb[0].mxu1  ;;  %v1430_v23 = vpop.f32.mrb[0].mxu0 }
 0x1be   :  { %v1431_v59 = vadd.f32 %v1430_v23, %v1110_v62  ;;  %v1112_v19 = vpop.f32.mrb[1].mxu1  ;;  %v1432_v47 = vpop.f32.mrb[1].mxu0 }
 0x1bf   :  { %v1433_v2 = vadd.f32 %v1432_v47, %v1112_v19 }
 0x1c0   :  { %v1447_v5 = vadd.f32 %v1445_v56, %v1431_v59 }
 0x1c1   :  { %v1448_v42 = vadd.f32 %v1445_v56, %v1433_v2 }
 0x1c2   :  { %1449 = vst [vmem:[#allocation2] sm:$0xff] %v1447_v5 }
 0x1c3   :  { %1451 = vst.msk [vmem:[#allocation2 + $0x8] sm:$0xff] %vm1450_vm2, %v1448_v42 }
 0x1c4   :  { %1867 = shalt.err (!%p1864_p4)
}
 0x1c5   :  { %s1868_s13 = scalar_lea.hbm %s3695_s3, 256 }
 0x1c6   :  { %p1869_p5 = scmp.ne.s32.totalorder %s3695_s3, %s1868_s13  ;;  %p1872_p6 = scmp.lt.u32.totalorder %s1868_s13, %s3695_s3 }
 0x1c8   :  { %p1874_p7 = pnand %p1872_p6, %p1869_p5 }
 0x1ca   :  { %1877 = shalt.err (!%p1874_p7)
}
 0x1cb   :  { %1461 = dma.vmem_to_hbm [thread:$0]  %s1459_s10, 256, %s3695_s3, [#allocation3]  }
 0x1cc   :  { %1878 = dma.done.wait [#allocation3], 256  }
 0x1cd   :  { %1879 = vsyncadd [#allocation3], 4294967040 }
 0x1ce   :  { %1465 = vsyncpa [#allocation3], 1 }

</bundles_post_ra>
